<compile_context>
chip_gen: v7x
topology: tpu7x:2x2x1
jax: 0.10.0
libtpu: 0.0.40
codegen_flags: <defaults>
</compile_context>

<pallas_src>
import numpy as np
import jax
import jax.numpy as jnp
from jax import lax
from jax.experimental import pallas as pl
from jax.experimental.pallas import tpu as pltpu

# Finite "minus infinity": keeps exp(m_old - m_new) NaN-free while both are still the sentinel.
_NEG_BIG = -1.0e30


def _entropy_stats_kernel(lab_s_ref, lab_l_ref, act_ref, m_ref, z_ref, u_ref, cnt_ref):
    """Accumulate per-(class, prototype) softmax statistics over one pixel tile.

    lab_s_ref : (1, T, 1) int32  shifted labels, pixels on sublanes (-1 = ignore / padding)
    lab_l_ref : (1, 1, T) int32  same labels, pixels on lanes (one-hot LHS for the MXU)
    act_ref   : (1, T, P) f32/bf16  activations, pixels on sublanes, prototypes on lanes
    m_ref     : (1, 1, 1, P) f32  running max over valid pixels (per prototype)
    z_ref     : (1, 1, C, P) f32  sum_{label==c} exp(a - m)
    u_ref     : (1, 1, C, P) f32  sum_{label==c} a * exp(a - m)
    cnt_ref   : (1, 1, C, 1) f32  per-class valid-pixel counts
    """
    t = pl.program_id(2)

    @pl.when(t == 0)
    def _init():
        m_ref[...] = jnp.full_like(m_ref, _NEG_BIG)
        z_ref[...] = jnp.zeros_like(z_ref)
        u_ref[...] = jnp.zeros_like(u_ref)
        cnt_ref[...] = jnp.zeros_like(cnt_ref)

    lbl_s = lab_s_ref[0]                          # (T, 1)
    lbl_l = lab_l_ref[0]                          # (1, T)
    act = act_ref[0].astype(jnp.float32)          # (T, P)  (upcast is a no-op for f32 input)
    num_classes = z_ref.shape[2]

    # Mask ignore pixels and the unspecified ragged tail before anything else; garbage never
    # reaches the max, the exp, or the MXU contraction.
    valid = lbl_s >= 0                            # (T, 1), broadcasts along the P lanes
    act_v = jnp.where(valid, act, _NEG_BIG)

    m_old = m_ref[0, 0]                           # (1, P)
    m_new = jnp.maximum(m_old, jnp.max(act_v, axis=0, keepdims=True))
    alpha = jnp.exp(m_old - m_new)                # (1, P) rescale for previous partial sums

    # One exp per element, shared across classes (the per-prototype max over all valid pixels
    # upper-bounds every class max, which is all the shifted-softmax identity needs).
    e = jnp.exp(act_v - m_new)                    # (T, P); exactly 0 at masked pixels
    ae = act_v * e                                # finite everywhere; one-hot zeros masked rows

    # One-hot over classes with pixels on lanes -> two standard-orientation MXU matmuls
    # (M=C, K=tile, N=P).  Labels -1 / out-of-range produce an all-zero column.
    cls_iota = lax.broadcasted_iota(jnp.int32, (num_classes, lbl_l.shape[1]), 0)
    onehot = (cls_iota == lbl_l).astype(jnp.float32)                  # (C, T)

    z_tile = jnp.dot(onehot, e, preferred_element_type=jnp.float32)   # (C, P)
    u_tile = jnp.dot(onehot, ae, preferred_element_type=jnp.float32)  # (C, P)
    c_tile = jnp.sum(onehot, axis=1, keepdims=True)                   # (C, 1) pixel counts

    m_ref[0, 0] = m_new
    z_ref[0, 0] = z_ref[0, 0] * alpha + z_tile    # alpha (1, P) broadcasts along C sublanes
    u_ref[0, 0] = u_ref[0, 0] * alpha + u_tile
    cnt_ref[0, 0] = cnt_ref[0, 0] + c_tile


def _tpu_info():
    """Best-effort (vmem_capacity_bytes, tensorcores_per_chip) with safe fallbacks."""
    vmem = 64 * 1024 * 1024
    cores = 1
    try:
        info = pltpu.get_tpu_info()
        for name in ("vmem_capacity_bytes", "vmem_size_bytes", "vmem_bytes"):
            v = getattr(info, name, None)
            if v:
                vmem = int(v)
                break
        for name in ("num_tensorcores", "tensorcore_count", "cores_per_chip",
                     "num_cores_per_chip"):
            v = getattr(info, name, None)
            if v:
                cores = int(v)
                break
    except Exception:
        pass
    if cores == 1:
        try:
            kind = jax.devices()[0].device_kind.lower()
            if "7x" in kind or "v7" in kind or "v4" in kind:   # 2 TensorCores per chip/device
                cores = 2
        except Exception:
            pass
    return vmem, cores


def entropy_spat_loss_pallas(prototype_activations, target_labels,
                             prototype_class_identity, *, tile_pixels=None):
    """prototype_activations: (B, H, W, P) or (B, HW, P) float32/bfloat16;
    target_labels: (B, H, W) or (B, HW) int (0 = ignore, 1..C real classes -- mirrors the
    `target_labels - 1` shift in PyTorch); prototype_class_identity: (P, C) {0, 1}."""
    B = target_labels.shape[0]
    P, C = prototype_class_identity.shape

    acts = prototype_activations.reshape(B, -1, P)      # native layout: P is the minor dim
    N = acts.shape[1]
    if acts.dtype != jnp.float32 and acts.dtype != jnp.bfloat16:
        acts = acts.astype(jnp.float32)
    labels = target_labels.reshape(B, N).astype(jnp.int32) - 1   # -1 = ignore

    vmem_cap, num_tc = _tpu_info()

    # ---- pixel-tile sizing: byte budget, always a multiple of 128 (or the full pixel dim) ----
    itemsize = acts.dtype.itemsize
    lane_pad = ((P + 127) // 128) * 128                  # VMEM lane footprint of the act tile
    vmem_row_bytes = lane_pad * itemsize
    act_tile_budget = min(4 << 20, vmem_cap // 16)       # per activation buffer (double-buffered)
    if tile_pixels is None:
        tile = (act_tile_budget // vmem_row_bytes) // 128 * 128
    else:
        tile = (int(tile_pixels) // 128) * 128
    tile = max(128, tile)
    if tile >= N:
        tile = N                                         # single full block (== full dim is legal)
    n_tiles = pl.cdiv(N, tile)

    # ---- feed the second TensorCore (v7x/v4) when the batch axis cannot ----------------------
    if num_tc >= 2 and B == 1 and n_tiles >= 2:
        n_outer = 2
        n_inner = pl.cdiv(n_tiles, 2)                    # odd counts allowed: one all-(-1) tile
    else:
        n_outer = 1
        n_inner = n_tiles

    # Pad the *labels only* (tiny) so every grid step has a fully defined mask; the activation
    # tail block is unspecified data which the mask removes from every statistic.
    n_lab = n_outer * n_inner * tile
    lab = jnp.pad(labels, ((0, 0), (0, n_lab - N)), constant_values=-1)
    lab_s = lab.reshape(B, n_lab, 1)                     # pixels on sublanes (mask)
    lab_l = lab.reshape(B, 1, n_lab)                     # pixels on lanes (one-hot LHS)

    vmem_limit = int(min(vmem_cap * 3 // 4, 64 << 20))   # generation-aware, never near physical
    act_blocks = n_tiles                                 # blocks that actually cover N

    mx, z, u, cnt = pl.pallas_call(
        _entropy_stats_kernel,
        out_shape=(
            jax.ShapeDtypeStruct((B, n_outer, 1, P), jnp.float32),
            jax.ShapeDtypeStruct((B, n_outer, C, P), jnp.float32),
            jax.ShapeDtypeStruct((B, n_outer, C, P), jnp.float32),
            jax.ShapeDtypeStruct((B, n_outer, C, 1), jnp.float32),
        ),
        grid=(B, n_outer, n_inner),
        in_specs=[
            pl.BlockSpec((1, tile, 1), lambda b, o, t: (b, o * n_inner + t, 0)),
            pl.BlockSpec((1, 1, tile), lambda b, o, t: (b, 0, o * n_inner + t)),
            # Clamp so the (rare) extra step of an odd 2-TC split never indexes past the
            # activations; its labels are all -1, so the duplicated block contributes nothing.
            # (If traces ever show exposed DMA here, pipeline_mode=pl.Buffered(3) is the knob.)
            pl.BlockSpec((1, tile, P),
                         lambda b, o, t: (b, jnp.minimum(o * n_inner + t, act_blocks - 1), 0)),
        ],
        out_specs=(
            pl.BlockSpec((1, 1, 1, P), lambda b, o, t: (b, o, 0, 0)),   # running max
            pl.BlockSpec((1, 1, C, P), lambda b, o, t: (b, o, 0, 0)),   # Z
            pl.BlockSpec((1, 1, C, P), lambda b, o, t: (b, o, 0, 0)),   # U
            pl.BlockSpec((1, 1, C, 1), lambda b, o, t: (b, o, 0, 0)),   # per-class pixel counts
        ),
        compiler_params=pltpu.CompilerParams(
            dimension_semantics=("parallel", "parallel", "arbitrary"),
            vmem_limit_bytes=vmem_limit),
    )(lab_s, lab_l, acts)

    # ---- merge the outer (per-TensorCore) partials (online-softmax merge); trivial if 1 -------
    m = jnp.max(mx, axis=1, keepdims=True)               # (B, 1, 1, P)
    scale = jnp.exp(mx - m)                               # (B, n_outer, 1, P)
    Z = jnp.sum(z * scale, axis=1)                        # (B, C, P)
    U = jnp.sum(u * scale, axis=1)                        # (B, C, P)
    M = m[:, 0, 0]                                        # (B, P)
    counts = jnp.sum(cnt, axis=(1, 3))                    # (B, C)

    # ---- tiny glue in plain JAX ----------------------------------------------------------------
    identity = jnp.asarray(prototype_class_identity, jnp.float32)     # (P, C)
    num_protos = jnp.sum(identity, axis=0)                            # (C,)
    valid_bc = (counts >= 2.0) & (num_protos[None, :] > 0.0)          # torch: <2 px / no protos

    # H = log Z - U/Z + m  (exact for any shift m >= class max).
    # TODO(synk): if a class's activations all sit ~87+ below the prototype's global max, Z
    # underflows to 0 and this (prototype, class) term falls back to 0 instead of its true value.
    z_safe = jnp.where(Z > 0.0, Z, 1.0)
    entropy = jnp.where(Z > 0.0, jnp.log(z_safe) - U / z_safe + M[:, None, :], 0.0)  # (B, C, P)
    ent_norm = entropy / jnp.log(jnp.maximum(counts, 2.0))[:, :, None]
    ent_norm = jnp.where(valid_bc[:, :, None], ent_norm, 0.0)

    per_class = (jnp.einsum("bcp,pc->bc", ent_norm, identity)
                 / jnp.maximum(num_protos, 1.0)[None, :])             # mean over class's protos
    n_valid = jnp.sum(valid_bc.astype(jnp.float32))
    loss = jnp.where(n_valid > 0.0,
                     jnp.sum(per_class) / jnp.maximum(n_valid, 1.0),
                     0.0)
    return loss.astype(jnp.float32)


def _ref_entropy_spat_loss(acts, labels, identity):
    """NumPy (float64) reference mirroring the PyTorch forward exactly."""
    B = labels.shape[0]
    P, C = identity.shape
    lab = labels.reshape(B, -1).astype(np.int64) - 1
    act = acts.reshape(B, -1, P).astype(np.float64)
    vals = []
    for b in range(B):
        for c in np.unique(lab[b]):
            if c < 0 or c >= C:
                continue
            protos = np.nonzero(identity[:, c])[0]
            if len(protos) == 0:
                continue
            mask = lab[b] == c
            n = int(mask.sum())
            if n < 2:
                continue
            ents = []
            for p in protos:
                a = act[b, mask, p]
                a = a - a.max()
                e = np.exp(a)
                zz = e.sum()
                prob = e / zz
                logprob = a - np.log(zz)
                ents.append(-(prob * logprob).sum() / np.log(n))
            vals.append(np.mean(ents))
    return np.float32(np.mean(vals)) if vals else np.float32(0.0)


if __name__ == "__main__":
    keys = jax.random.split(jax.random.PRNGKey(0), 8)
    ok = True

    def _check(name, acts, labels, identity, tile_pixels):
        global ok
        out = jax.block_until_ready(
            entropy_spat_loss_pallas(acts, labels, identity, tile_pixels=tile_pixels))
        ref = _ref_entropy_spat_loss(np.asarray(acts), np.asarray(labels), np.asarray(identity))
        if not np.allclose(float(out), float(ref), rtol=1e-4, atol=1e-5):
            ok = False
            print(f"MISMATCH {name}: pallas={float(out)} ref={float(ref)}")

    # config 1: batch feeds the parallel axis, one full-width pixel tile per image
    B, H, W, P, C = 2, 16, 16, 8, 4
    acts = jax.random.normal(keys[0], (B, H, W, P), dtype=jnp.float32)
    labels = jax.random.randint(keys[1], (B, H, W), 0, C + 1, dtype=jnp.int32)   # 0 = ignore
    identity = jnp.zeros((P, C), jnp.float32).at[jnp.arange(P), jnp.arange(P) % C].set(1.0)
    _check("config1", acts, labels, identity, 256)

    # config 2: B=1 with an odd tile count (3 x 384 over N=1024): exercises multi-tile
    # accumulation, and on 2-TC chips the outer split incl. the clamped fully-padded tile;
    # also a class with no pixels and a class with no prototypes.
    B, H, W, P, C = 1, 32, 32, 10, 6
    acts = jax.random.normal(keys[2], (B, H, W, P), dtype=jnp.float32)
    labels = jax.random.randint(keys[3], (B, H, W), 0, 5, dtype=jnp.int32)       # classes 4,5 absent
    identity = jnp.zeros((P, C), jnp.float32).at[jnp.arange(P), jnp.arange(P) % 5].set(1.0)
    _check("config2", acts, labels, identity, 384)

    # config 3: ragged pixel count (N=400 with 128-wide tiles) + an out-of-range label id
    B, H, W, P, C = 2, 20, 20, 8, 4
    acts = jax.random.normal(keys[4], (B, H, W, P), dtype=jnp.float32)
    labels = jax.random.randint(keys[5], (B, H, W), 0, C + 2, dtype=jnp.int32)
    identity = jnp.zeros((P, C), jnp.float32).at[jnp.arange(P), jnp.arange(P) % C].set(1.0)
    _check("config3", acts, labels, identity, 128)

    # config 4: bf16 activations with a lane-dense prototype axis (P=128), byte-budgeted tile
    B, H, W, P, C = 1, 16, 16, 128, 8
    acts = jax.random.normal(keys[6], (B, H, W, P), dtype=jnp.float32).astype(jnp.bfloat16)
    labels = jax.random.randint(keys[7], (B, H, W), 0, C + 1, dtype=jnp.int32)
    identity = jnp.zeros((P, C), jnp.float32).at[jnp.arange(P), jnp.arange(P) % C].set(1.0)
    _check("config4", acts, labels, identity, None)

    if ok:
        print("KERNEL_OK")
</pallas_src>

<mosaic_0001>
module attributes {stable_mosaic.version = 11 : i64} {
  func.func @_entropy_stats_kernel(%arg0: i32, %arg1: i32, %arg2: i32, %arg3: memref<1x256x1xi32, #tpu.memory_space<vmem>>, %arg4: memref<1x1x256xi32, #tpu.memory_space<vmem>>, %arg5: memref<1x256x8xf32, #tpu.memory_space<vmem>>, %arg6: memref<1x1x1x8xf32, #tpu.memory_space<vmem>>, %arg7: memref<1x1x4x8xf32, #tpu.memory_space<vmem>>, %arg8: memref<1x1x4x8xf32, #tpu.memory_space<vmem>>, %arg9: memref<1x1x4x1xf32, #tpu.memory_space<vmem>>) attributes {dimension_semantics = [#tpu.dimension_semantics<parallel>, #tpu.dimension_semantics<parallel>, #tpu.dimension_semantics<arbitrary>], iteration_bounds = array<i64: 2, 1, 1>, scalar_prefetch = 0 : i64, scratch_operands = 0 : i64, tpu.core_type = #tpu.core_type<tc>, window_params = [{transform_indices = @transform_0, window_bounds = array<i64: 1, 256, 1>}, {transform_indices = @transform_1, window_bounds = array<i64: 1, 1, 256>}, {transform_indices = @transform_2, window_bounds = array<i64: 1, 256, 8>}, {transform_indices = @transform_3, window_bounds = array<i64: 1, 1, 1, 8>}, {transform_indices = @transform_4, window_bounds = array<i64: 1, 1, 4, 8>}, {transform_indices = @transform_5, window_bounds = array<i64: 1, 1, 4, 8>}, {transform_indices = @transform_6, window_bounds = array<i64: 1, 1, 4, 1>}]} {
    %c0_i32 = arith.constant 0 : i32
    %0 = arith.cmpi eq, %arg2, %c0_i32 : i32
    %1 = arith.extui %0 : i1 to i32
    %c0_i32_0 = arith.constant 0 : i32
    %2 = arith.cmpi ne, %1, %c0_i32_0 : i32
    scf.if %2 {
      %cst_46 = arith.constant -1.000000e+30 : f32
      %60 = vector.broadcast %cst_46 : f32 to vector<1x1x1x8xf32>
      %c0_47 = arith.constant 0 : index
      %c0_48 = arith.constant 0 : index
      %c0_49 = arith.constant 0 : index
      %c0_50 = arith.constant 0 : index
      %61 = vector.load %arg6[%c0_47, %c0_48, %c0_49, %c0_50] : memref<1x1x1x8xf32, #tpu.memory_space<vmem>>, vector<1x1x1x8xf32>
      tpu.vector_store %arg6[%c0_47, %c0_48, %c0_49, %c0_50], %60 {strides = array<i32>} : memref<1x1x1x8xf32, #tpu.memory_space<vmem>>, vector<1x1x1x8xf32>,
      %cst_51 = arith.constant 0.000000e+00 : f32
      %62 = vector.broadcast %cst_51 : f32 to vector<1x1x4x8xf32>
      %c0_52 = arith.constant 0 : index
      %c0_53 = arith.constant 0 : index
      %c0_54 = arith.constant 0 : index
      %c0_55 = arith.constant 0 : index
      %63 = vector.load %arg7[%c0_52, %c0_53, %c0_54, %c0_55] : memref<1x1x4x8xf32, #tpu.memory_space<vmem>>, vector<1x1x4x8xf32>
      tpu.vector_store %arg7[%c0_52, %c0_53, %c0_54, %c0_55], %62 {strides = array<i32>} : memref<1x1x4x8xf32, #tpu.memory_space<vmem>>, vector<1x1x4x8xf32>,
      %cst_56 = arith.constant 0.000000e+00 : f32
      %64 = vector.broadcast %cst_56 : f32 to vector<1x1x4x8xf32>
      %c0_57 = arith.constant 0 : index
      %c0_58 = arith.constant 0 : index
      %c0_59 = arith.constant 0 : index
      %c0_60 = arith.constant 0 : index
      %65 = vector.load %arg8[%c0_57, %c0_58, %c0_59, %c0_60] : memref<1x1x4x8xf32, #tpu.memory_space<vmem>>, vector<1x1x4x8xf32>
      tpu.vector_store %arg8[%c0_57, %c0_58, %c0_59, %c0_60], %64 {strides = array<i32>} : memref<1x1x4x8xf32, #tpu.memory_space<vmem>>, vector<1x1x4x8xf32>,
      %cst_61 = arith.constant 0.000000e+00 : f32
      %66 = vector.broadcast %cst_61 : f32 to vector<1x1x4x1xf32>
      %c0_62 = arith.constant 0 : index
      %c0_63 = arith.constant 0 : index
      %c0_64 = arith.constant 0 : index
      %c0_65 = arith.constant 0 : index
      %67 = vector.load %arg9[%c0_62, %c0_63, %c0_64, %c0_65] : memref<1x1x4x1xf32, #tpu.memory_space<vmem>>, vector<1x1x4x1xf32>
      tpu.vector_store %arg9[%c0_62, %c0_63, %c0_64, %c0_65], %66 {strides = array<i32>} : memref<1x1x4x1xf32, #tpu.memory_space<vmem>>, vector<1x1x4x1xf32>,
    } else {
    }
    %c0 = arith.constant 0 : index
    %c0_1 = arith.constant 0 : index
    %c0_2 = arith.constant 0 : index
    %3 = vector.load %arg3[%c0, %c0_1, %c0_2] : memref<1x256x1xi32, #tpu.memory_space<vmem>>, vector<1x256x1xi32>
    %4 = vector.shape_cast %3 : vector<1x256x1xi32> to vector<256x1xi32>
    %c0_3 = arith.constant 0 : index
    %c0_4 = arith.constant 0 : index
    %c0_5 = arith.constant 0 : index
    %5 = vector.load %arg4[%c0_3, %c0_4, %c0_5] : memref<1x1x256xi32, #tpu.memory_space<vmem>>, vector<1x1x256xi32>
    %6 = vector.shape_cast %5 : vector<1x1x256xi32> to vector<1x256xi32>
    %c0_6 = arith.constant 0 : index
    %c0_7 = arith.constant 0 : index
    %c0_8 = arith.constant 0 : index
    %7 = vector.load %arg5[%c0_6, %c0_7, %c0_8] : memref<1x256x8xf32, #tpu.memory_space<vmem>>, vector<1x256x8xf32>
    %8 = vector.shape_cast %7 : vector<1x256x8xf32> to vector<256x8xf32>
    %c0_i32_9 = arith.constant 0 : i32
    %9 = vector.broadcast %c0_i32_9 : i32 to vector<256x1xi32>
    %10 = arith.cmpi sge, %4, %9 : vector<256x1xi32>
    %cst = arith.constant -1.000000e+30 : f32
    %11 = vector.shape_cast %10 : vector<256x1xi1> to vector<256x1xi1>
    %12 = vector.broadcast %11 : vector<256x1xi1> to vector<256x8xi1>
    %13 = vector.broadcast %cst : f32 to vector<256x8xf32>
    %14 = arith.select %12, %8, %13 : vector<256x8xi1>, vector<256x8xf32>
    %c0_10 = arith.constant 0 : index
    %c0_11 = arith.constant 0 : index
    %c0_12 = arith.constant 0 : index
    %c0_13 = arith.constant 0 : index
    %15 = vector.load %arg6[%c0_10, %c0_11, %c0_12, %c0_13] : memref<1x1x1x8xf32, #tpu.memory_space<vmem>>, vector<1x1x1x8xf32>
    %16 = vector.shape_cast %15 : vector<1x1x1x8xf32> to vector<1x8xf32>
    %cst_14 = arith.constant dense<0xFF800000> : vector<8xf32>
    %17 = vector.multi_reduction <maximumf>, %14, %cst_14 [0] : vector<256x8xf32> to vector<8xf32>
    %18 = vector.shape_cast %17 : vector<8xf32> to vector<1x8xf32>
    %19 = arith.maximumf %16, %18 : vector<1x8xf32>
    %20 = arith.subf %16, %19 : vector<1x8xf32>
    %21 = math.exp %20 : vector<1x8xf32>
    %22 = vector.broadcast %19 : vector<1x8xf32> to vector<256x8xf32>
    %23 = arith.subf %14, %22 : vector<256x8xf32>
    %24 = math.exp %23 : vector<256x8xf32>
    %25 = arith.mulf %14, %24 : vector<256x8xf32>
    %26 = tpu.iota {dimensions = array<i32: 0>} : vector<4x256xi32>
    %27 = vector.broadcast %6 : vector<1x256xi32> to vector<4x256xi32>
    %28 = arith.cmpi eq, %26, %27 : vector<4x256xi32>
    %29 = arith.extui %28 : vector<4x256xi1> to vector<4x256xi32>
    %30 = arith.sitofp %29 : vector<4x256xi32> to vector<4x256xf32>
    %cst_15 = arith.constant dense<0.000000e+00> : vector<4x8xf32>
    %31 = tpu.matmul %30, %24, %cst_15 {dimension_numbers = #tpu.dot_dimension_numbers<[1], [0], [0], [1], [0, 0, 1, 1], [], []>} : vector<4x256xf32>, vector<256x8xf32>, vector<4x8xf32> -> vector<4x8xf32>
    %cst_16 = arith.constant dense<0.000000e+00> : vector<4x8xf32>
    %32 = tpu.matmul %30, %25, %cst_16 {dimension_numbers = #tpu.dot_dimension_numbers<[1], [0], [0], [1], [0, 0, 1, 1], [], []>} : vector<4x256xf32>, vector<256x8xf32>, vector<4x8xf32> -> vector<4x8xf32>
    %cst_17 = arith.constant dense<0.000000e+00> : vector<4xf32>
    %33 = vector.multi_reduction <add>, %30, %cst_17 [1] : vector<4x256xf32> to vector<4xf32>
    %34 = vector.shape_cast %33 : vector<4xf32> to vector<4x1xf32>
    %c0_18 = arith.constant 0 : index
    %c0_19 = arith.constant 0 : index
    %c0_20 = arith.constant 0 : index
    %c0_21 = arith.constant 0 : index
    %35 = vector.load %arg6[%c0_18, %c0_19, %c0_20, %c0_21] : memref<1x1x1x8xf32, #tpu.memory_space<vmem>>, vector<1x1x1x8xf32>
    %36 = vector.shape_cast %35 : vector<1x1x1x8xf32> to vector<1x8xf32>
    %37 = vector.shape_cast %19 : vector<1x8xf32> to vector<1x1x1x8xf32>
    tpu.vector_store %arg6[%c0_18, %c0_19, %c0_20, %c0_21], %37 {strides = array<i32>} : memref<1x1x1x8xf32, #tpu.memory_space<vmem>>, vector<1x1x1x8xf32>,
    %c0_22 = arith.constant 0 : index
    %c0_23 = arith.constant 0 : index
    %c0_24 = arith.constant 0 : index
    %c0_25 = arith.constant 0 : index
    %38 = vector.load %arg7[%c0_22, %c0_23, %c0_24, %c0_25] : memref<1x1x4x8xf32, #tpu.memory_space<vmem>>, vector<1x1x4x8xf32>
    %39 = vector.shape_cast %38 : vector<1x1x4x8xf32> to vector<4x8xf32>
    %40 = vector.broadcast %21 : vector<1x8xf32> to vector<4x8xf32>
    %41 = arith.mulf %39, %40 : vector<4x8xf32>
    %42 = arith.addf %41, %31 : vector<4x8xf32>
    %c0_26 = arith.constant 0 : index
    %c0_27 = arith.constant 0 : index
    %c0_28 = arith.constant 0 : index
    %c0_29 = arith.constant 0 : index
    %43 = vector.load %arg7[%c0_26, %c0_27, %c0_28, %c0_29] : memref<1x1x4x8xf32, #tpu.memory_space<vmem>>, vector<1x1x4x8xf32>
    %44 = vector.shape_cast %43 : vector<1x1x4x8xf32> to vector<4x8xf32>
    %45 = vector.shape_cast %42 : vector<4x8xf32> to vector<1x1x4x8xf32>
    tpu.vector_store %arg7[%c0_26, %c0_27, %c0_28, %c0_29], %45 {strides = array<i32>} : memref<1x1x4x8xf32, #tpu.memory_space<vmem>>, vector<1x1x4x8xf32>,
    %c0_30 = arith.constant 0 : index
    %c0_31 = arith.constant 0 : index
    %c0_32 = arith.constant 0 : index
    %c0_33 = arith.constant 0 : index
    %46 = vector.load %arg8[%c0_30, %c0_31, %c0_32, %c0_33] : memref<1x1x4x8xf32, #tpu.memory_space<vmem>>, vector<1x1x4x8xf32>
    %47 = vector.shape_cast %46 : vector<1x1x4x8xf32> to vector<4x8xf32>
    %48 = vector.broadcast %21 : vector<1x8xf32> to vector<4x8xf32>
    %49 = arith.mulf %47, %48 : vector<4x8xf32>
    %50 = arith.addf %49, %32 : vector<4x8xf32>
    %c0_34 = arith.constant 0 : index
    %c0_35 = arith.constant 0 : index
    %c0_36 = arith.constant 0 : index
    %c0_37 = arith.constant 0 : index
    %51 = vector.load %arg8[%c0_34, %c0_35, %c0_36, %c0_37] : memref<1x1x4x8xf32, #tpu.memory_space<vmem>>, vector<1x1x4x8xf32>
    %52 = vector.shape_cast %51 : vector<1x1x4x8xf32> to vector<4x8xf32>
    %53 = vector.shape_cast %50 : vector<4x8xf32> to vector<1x1x4x8xf32>
    tpu.vector_store %arg8[%c0_34, %c0_35, %c0_36, %c0_37], %53 {strides = array<i32>} : memref<1x1x4x8xf32, #tpu.memory_space<vmem>>, vector<1x1x4x8xf32>,
    %c0_38 = arith.constant 0 : index
    %c0_39 = arith.constant 0 : index
    %c0_40 = arith.constant 0 : index
    %c0_41 = arith.constant 0 : index
    %54 = vector.load %arg9[%c0_38, %c0_39, %c0_40, %c0_41] : memref<1x1x4x1xf32, #tpu.memory_space<vmem>>, vector<1x1x4x1xf32>
    %55 = vector.shape_cast %54 : vector<1x1x4x1xf32> to vector<4x1xf32>
    %56 = arith.addf %55, %34 : vector<4x1xf32>
    %c0_42 = arith.constant 0 : index
    %c0_43 = arith.constant 0 : index
    %c0_44 = arith.constant 0 : index
    %c0_45 = arith.constant 0 : index
    %57 = vector.load %arg9[%c0_42, %c0_43, %c0_44, %c0_45] : memref<1x1x4x1xf32, #tpu.memory_space<vmem>>, vector<1x1x4x1xf32>
    %58 = vector.shape_cast %57 : vector<1x1x4x1xf32> to vector<4x1xf32>
    %59 = vector.shape_cast %56 : vector<4x1xf32> to vector<1x1x4x1xf32>
    tpu.vector_store %arg9[%c0_42, %c0_43, %c0_44, %c0_45], %59 {strides = array<i32>} : memref<1x1x4x1xf32, #tpu.memory_space<vmem>>, vector<1x1x4x1xf32>,
    return
  }
  func.func @transform_0(%arg0: i32, %arg1: i32, %arg2: i32) -> (i32, i32, i32) {
    %c1_i32 = arith.constant 1 : i32
    %0 = arith.muli %arg1, %c1_i32 : i32
    %1 = arith.addi %0, %arg2 : i32
    %c0_i32 = arith.constant 0 : i32
    %c0_i32_0 = arith.constant 0 : i32
    return %arg0, %1, %c0_i32 : i32, i32, i32
  }
  func.func @transform_1(%arg0: i32, %arg1: i32, %arg2: i32) -> (i32, i32, i32) {
    %c1_i32 = arith.constant 1 : i32
    %0 = arith.muli %arg1, %c1_i32 : i32
    %1 = arith.addi %0, %arg2 : i32
    %c0_i32 = arith.constant 0 : i32
    %c0_i32_0 = arith.constant 0 : i32
    return %arg0, %c0_i32, %1 : i32, i32, i32
  }
  func.func @transform_2(%arg0: i32, %arg1: i32, %arg2: i32) -> (i32, i32, i32) {
    %c1_i32 = arith.constant 1 : i32
    %0 = arith.muli %arg1, %c1_i32 : i32
    %1 = arith.addi %0, %arg2 : i32
    %c0_i32 = arith.constant 0 : i32
    %2 = arith.minsi %1, %c0_i32 : i32
    %c0_i32_0 = arith.constant 0 : i32
    %c0_i32_1 = arith.constant 0 : i32
    return %arg0, %2, %c0_i32_0 : i32, i32, i32
  }
  func.func @transform_3(%arg0: i32, %arg1: i32, %arg2: i32) -> (i32, i32, i32, i32) {
    %c0_i32 = arith.constant 0 : i32
    %c0_i32_0 = arith.constant 0 : i32
    %c0_i32_1 = arith.constant 0 : i32
    return %arg0, %arg1, %c0_i32, %c0_i32_0 : i32, i32, i32, i32
  }
  func.func @transform_4(%arg0: i32, %arg1: i32, %arg2: i32) -> (i32, i32, i32, i32) {
    %c0_i32 = arith.constant 0 : i32
    %c0_i32_0 = arith.constant 0 : i32
    %c0_i32_1 = arith.constant 0 : i32
    return %arg0, %arg1, %c0_i32, %c0_i32_0 : i32, i32, i32, i32
  }
  func.func @transform_5(%arg0: i32, %arg1: i32, %arg2: i32) -> (i32, i32, i32, i32) {
    %c0_i32 = arith.constant 0 : i32
    %c0_i32_0 = arith.constant 0 : i32
    %c0_i32_1 = arith.constant 0 : i32
    return %arg0, %arg1, %c0_i32, %c0_i32_0 : i32, i32, i32, i32
  }
  func.func @transform_6(%arg0: i32, %arg1: i32, %arg2: i32) -> (i32, i32, i32, i32) {
    %c0_i32 = arith.constant 0 : i32
    %c0_i32_0 = arith.constant 0 : i32
    %c0_i32_1 = arith.constant 0 : i32
    return %arg0, %arg1, %c0_i32, %c0_i32_0 : i32, i32, i32, i32
  }
}

</mosaic_0001>

<bundles_post_ra>
// kernel: tpu_custom_call.1
= control target key start
LH: loop header
LB: loop body
LE: loop exit
PB: predicated region body
PF: predicated region fallthrough
CT: control target
= control target key end

     0   :  { %12 = vsyncpa [#allocation3], 0  ;;  %s2568_s0 = inlined_call_operand.vmem [shape: s32[2,256,1], index: 0, kind: input, shape index: {}]   ;;  %s2569_s1 = inlined_call_operand.vmem [shape: s32[2,1,256], index: 1, kind: input, shape index: {}]   ;;  %s2570_s2 = inlined_call_operand.vmem [shape: f32[2,256,8], index: 2, kind: input, shape index: {}]   ;;  %s2571_s3 = inlined_call_operand.hbm [shape: f32[2,1,1,8], index: 3, kind: output, shape index: {0}]   ;;  %s2572_s4 = inlined_call_operand.hbm [shape: f32[2,1,4,8], index: 4, kind: output, shape index: {1}]   ;;  %s2573_s5 = inlined_call_operand.hbm [shape: f32[2,1,4,8], index: 5, kind: output, shape index: {2}]   ;;  %s2574_s6 = inlined_call_operand.vmem [shape: f32[2,1,4,1], index: 6, kind: output, shape index: {3}]  }
   0x1   :  { %14 = vsyncpa [#allocation3 + $0x1], 0 }
   0x2   :  { %15 = vsyncpa [#allocation5], 0 }
   0x3   :  { %17 = vsyncpa [#allocation5 + $0x1], 0  ;;  %s1865_s21 = smov 0   ;;  %s1867_s22 = smov 0  }
   0x4   :  { %s1869_s23 = smov 0   ;;  %s1871_s24 = smov 0  }
   0x5   :  { %s1873_s25 = smov 0   ;;  %s1875_s26 = smov 0  }
   0x6 LB: > { %s2586_s27 = sadd.s32 4294967295, %s1821_s26   ;;  %s2585_s28 = sadd.s32 4294967294, %s1821_s26   ;;  %s1821_s26 = sphi %s1875_s26, %s23_s26   ;;  %s1817_s25 = sphi %s1873_s25, %s2612_s25   ;;  %s1813_s24 = sphi %s1871_s24, %s2611_s24   ;;  %s1809_s23 = sphi %s1869_s23, %s2610_s23   ;;  %s1805_s22 = sphi %s1867_s22, %s2609_s22   ;;  %s1801_s21 = sphi %s1865_s21, %s2608_s21  }
   0x7   : > { %s42_s29 = sadd.s32 1, %s1817_s25  ;;  %s145_s30 = sadd.s32 1, %s1809_s23 }
   0x8   : > { %p44_p0 = scmp.ge.s32.totalorder %s42_s29, 2  ;;  %p155_p1 = scmp.ne.s32.totalorder %s1809_s23, %s1805_s22 }
   0x9   : > { %p156_p2 = scmp.eq.s32.totalorder %s2586_s27, 1  ;;  %p161_p3 = scmp.ne.s32.totalorder %s1805_s22, %s1801_s21 }
   0xa   : > { %s2614_s29 = smov (%p44_p0, %s42_s29), 0  ;;  %p162_p5 = scmp.eq.s32.totalorder %s2585_s28, 1 }
   0xb   : > { %p1907_p4 = por %p156_p2, %p155_p1  ;;  %s140_s8 = ssub.s32 %s1817_s25, %s2614_s29 }
   0xc   : > { %p1388_p6 = scmp.ge.s32.totalorder %s1821_s26, 1  ;;  %p143_p7 = scmp.eq.s32.totalorder %s140_s8, 0 }
   0xd   : > { %p1916_p8 = por %p162_p5, %p161_p3  ;;  %p312_p9 = scmp.lt.s32.totalorder %s1821_s26, 3 }
   0xe   : > { %s1922_s10 = scalar_select %p143_p7, %s1809_s23, %s145_s30  }
   0xf   : > { %p313_p10 = pnand %p1388_p6, %p312_p9 }
  0x11   : > { %316 = sbr.rel (%p313_p10) target bundleno = 563 (0x233), region = 32 }
  0x18   : > { %p386_p11 = scmp.lt.s32.totalorder %s1813_s24, 1  ;;  %v1823_v0 = vmov 0   ;;  %s2003_s16 = sand.u32 1, %s1805_s22  }
  0x19   : > { %1616 = vset.pattern.permute.xlu1 %v1823_v0  ;;  %1615 = vset.pattern.permute.xlu0 %v1823_v0  ;;  %s2006_s17 = scalar_lea.vmem [#allocation2], %s2003_s16  ;;  %s1389_s18 = sshll.u32 %s2003_s16, 2 }
  0x1a   : > { %s1928_s11 = scalar_select %p386_p11, %s1813_s24, 1 }
  0x1b   : > { %s2011_s19 = scalar_lea.vmem [#allocation4], %s1389_s18  ;;  %s2020_s20 = scalar_lea.vmem [#allocation6], %s1389_s18 }
  0x1c   : > { %s1410_s12 = sshll.u32 %s1928_s11, 8  ;;  %s1393_s14 = sshll.u32 %s1928_s11, 1 }
  0x1d   : > { %s1936_s15 = scalar_lea.vmem %s2568_s0, %s1410_s12  ;;  %s2042_s13 = scalar_lea.vmem %s2570_s2, %s1410_s12 }
  0x1e   : > { %v443_v1 = vld [vmem:[%s1936_s15 + $0x10] sm:$0xff]  ;;  %v441_v2 = vld [vmem:[%s1936_s15] sm:$0xff]  ;;  %v444_v3 = vld [vmem:[%s1936_s15 + $0x18] sm:$0xff]  ;;  %s404_s18 = scalar_lea.vmem %s2569_s1, %s1393_s14  ;;  %s1396_s30 = sshll.u32 %s1928_s11, 2 }
  0x1f   : > { %vm508_vm0 = vcmp.ge.s32.totalorder %v443_v1, 0  ;;  %vm506_vm1 = vcmp.ge.s32.totalorder %v441_v2, 0  ;;  %vm509_vm2 = vcmp.ge.s32.totalorder %v444_v3, 0  ;;  %v442_v4 = vld [vmem:[%s1936_s15 + $0x8] sm:$0xff]  ;;  %v445_v8 = vld [vmem:[%s1936_s15 + $0x20] sm:$0xff]  ;;  %v448_v11 = vld [vmem:[%s1936_s15 + $0x38] sm:$0xff]  ;;  %s2427_s14 = scalar_lea.vmem %s2574_s6, %s1396_s30 }
  0x20   : > { %v540_v5 = vsel %vm508_vm0, 1, %v1823_v0  ;;  %v538_v6 = vsel %vm506_vm1, 1, %v1823_v0  ;;  %vm507_vm3 = vcmp.ge.s32.totalorder %v442_v4, 0  ;;  %v446_v7 = vld [vmem:[%s1936_s15 + $0x28] sm:$0xff]  ;;  %v541_v9 = vsel %vm509_vm2, 1, %v1823_v0  ;;  %v447_v12 = vld [vmem:[%s1936_s15 + $0x30] sm:$0xff] }
  0x21   : > { %577 = vperm.xlu1 %1616, %v540_v5   ;;  %571 = vperm.xlu0 %1615, %v538_v6   ;;  %v539_v10 = vsel %vm507_vm3, 1, %v1823_v0  ;;  %vm511_vm4 = vcmp.ge.s32.totalorder %v446_v7, 0  ;;  %vm510_vm5 = vcmp.ge.s32.totalorder %v445_v8, 0  ;;  %vm513_vm6 = vcmp.ge.s32.totalorder %v448_v11, 0  ;;  %v450_v15 = vld [vmem:[%s1936_s15 + $0x48] sm:$0xff]  ;;  %v449_v16 = vld [vmem:[%s1936_s15 + $0x40] sm:$0xff] }
  0x22   : > { %v543_v13 = vsel %vm511_vm4, 1, %v1823_v0  ;;  %v542_v14 = vsel %vm510_vm5, 1, %v1823_v0  ;;  %vm512_vm7 = vcmp.ge.s32.totalorder %v447_v12, 0  ;;  %v545_v17 = vsel %vm513_vm6, 1, %v1823_v0  ;;  %v452_v19 = vld [vmem:[%s1936_s15 + $0x58] sm:$0xff]  ;;  %v451_v20 = vld [vmem:[%s1936_s15 + $0x50] sm:$0xff] }
  0x23   : > { %v544_v18 = vsel %vm512_vm7, 1, %v1823_v0  ;;  %vm515_vm8 = vcmp.ge.s32.totalorder %v450_v15, 0  ;;  %vm514_vm9 = vcmp.ge.s32.totalorder %v449_v16, 0  ;;  %vm517_vm10 = vcmp.ge.s32.totalorder %v452_v19, 0  ;;  %v454_v23 = vld [vmem:[%s1936_s15 + $0x68] sm:$0xff]  ;;  %v453_v24 = vld [vmem:[%s1936_s15 + $0x60] sm:$0xff] }
  0x24   : > { %v547_v21 = vsel %vm515_vm8, 1, %v1823_v0  ;;  %v546_v22 = vsel %vm514_vm9, 1, %v1823_v0  ;;  %vm516_vm11 = vcmp.ge.s32.totalorder %v451_v20, 0  ;;  %v549_v25 = vsel %vm517_vm10, 1, %v1823_v0  ;;  %v456_v27 = vld [vmem:[%s1936_s15 + $0x78] sm:$0xff]  ;;  %v455_v28 = vld [vmem:[%s1936_s15 + $0x70] sm:$0xff] }
  0x25   : > { %580 = vperm.xlu1 %1616, %v541_v9   ;;  %574 = vperm.xlu0 %1615, %v539_v10   ;;  %v548_v26 = vsel %vm516_vm11, 1, %v1823_v0  ;;  %vm519_vm12 = vcmp.ge.s32.totalorder %v454_v23, 0  ;;  %vm518_vm13 = vcmp.ge.s32.totalorder %v453_v24, 0  ;;  %vm521_vm14 = vcmp.ge.s32.totalorder %v456_v27, 0  ;;  %v458_v31 = vld [vmem:[%s1936_s15 + $0x88] sm:$0xff]  ;;  %v457_v32 = vld [vmem:[%s1936_s15 + $0x80] sm:$0xff] }
  0x26   : > { %v551_v29 = vsel %vm519_vm12, 1, %v1823_v0  ;;  %v550_v30 = vsel %vm518_vm13, 1, %v1823_v0  ;;  %vm520_vm15 = vcmp.ge.s32.totalorder %v455_v28, 0  ;;  %v553_v33 = vsel %vm521_vm14, 1, %v1823_v0  ;;  %v460_v35 = vld [vmem:[%s1936_s15 + $0x98] sm:$0xff]  ;;  %v459_v36 = vld [vmem:[%s1936_s15 + $0x90] sm:$0xff] }
  0x27   : > { %v552_v34 = vsel %vm520_vm15, 1, %v1823_v0  ;;  %vm523_vm0 = vcmp.ge.s32.totalorder %v458_v31, 0  ;;  %vm522_vm1 = vcmp.ge.s32.totalorder %v457_v32, 0  ;;  %vm525_vm2 = vcmp.ge.s32.totalorder %v460_v35, 0  ;;  %v462_v39 = vld [vmem:[%s1936_s15 + $0xa8] sm:$0xff]  ;;  %v461_v40 = vld [vmem:[%s1936_s15 + $0xa0] sm:$0xff] }
  0x28   : > { %v555_v37 = vsel %vm523_vm0, 1, %v1823_v0  ;;  %v554_v38 = vsel %vm522_vm1, 1, %v1823_v0  ;;  %vm524_vm3 = vcmp.ge.s32.totalorder %v459_v36, 0  ;;  %v557_v41 = vsel %vm525_vm2, 1, %v1823_v0  ;;  %v464_v43 = vld [vmem:[%s1936_s15 + $0xb8] sm:$0xff]  ;;  %v463_v44 = vld [vmem:[%s1936_s15 + $0xb0] sm:$0xff] }
  0x29   : > { %586 = vperm.xlu1 %1616, %v543_v13   ;;  %583 = vperm.xlu0 %1615, %v542_v14   ;;  %v556_v42 = vsel %vm524_vm3, 1, %v1823_v0  ;;  %vm527_vm4 = vcmp.ge.s32.totalorder %v462_v39, 0  ;;  %vm526_vm5 = vcmp.ge.s32.totalorder %v461_v40, 0  ;;  %vm529_vm6 = vcmp.ge.s32.totalorder %v464_v43, 0  ;;  %v466_v47 = vld [vmem:[%s1936_s15 + $0xc8] sm:$0xff]  ;;  %v465_v48 = vld [vmem:[%s1936_s15 + $0xc0] sm:$0xff] }
  0x2a   : > { %v559_v45 = vsel %vm527_vm4, 1, %v1823_v0  ;;  %v558_v46 = vsel %vm526_vm5, 1, %v1823_v0  ;;  %vm528_vm7 = vcmp.ge.s32.totalorder %v463_v44, 0  ;;  %v561_v49 = vsel %vm529_vm6, 1, %v1823_v0  ;;  %v468_v51 = vld [vmem:[%s1936_s15 + $0xd8] sm:$0xff]  ;;  %v467_v52 = vld [vmem:[%s1936_s15 + $0xd0] sm:$0xff] }
  0x2b   : > { %v560_v50 = vsel %vm528_vm7, 1, %v1823_v0  ;;  %vm531_vm8 = vcmp.ge.s32.totalorder %v466_v47, 0  ;;  %vm530_vm9 = vcmp.ge.s32.totalorder %v465_v48, 0  ;;  %vm533_vm10 = vcmp.ge.s32.totalorder %v468_v51, 0  ;;  %v470_v55 = vld [vmem:[%s1936_s15 + $0xe8] sm:$0xff]  ;;  %v469_v56 = vld [vmem:[%s1936_s15 + $0xe0] sm:$0xff] }
  0x2c   : > { %v563_v53 = vsel %vm531_vm8, 1, %v1823_v0  ;;  %v562_v54 = vsel %vm530_vm9, 1, %v1823_v0  ;;  %vm532_vm11 = vcmp.ge.s32.totalorder %v467_v52, 0  ;;  %v565_v57 = vsel %vm533_vm10, 1, %v1823_v0  ;;  %v472_v59 = vld [vmem:[%s1936_s15 + $0xf8] sm:$0xff]  ;;  %v471_v60 = vld [vmem:[%s1936_s15 + $0xf0] sm:$0xff] }
  0x2d   : > { %592 = vperm.xlu1 %1616, %v545_v17   ;;  %589 = vperm.xlu0 %1615, %v544_v18   ;;  %v564_v58 = vsel %vm532_vm11, 1, %v1823_v0  ;;  %vm535_vm12 = vcmp.ge.s32.totalorder %v470_v55, 0  ;;  %vm534_vm13 = vcmp.ge.s32.totalorder %v469_v56, 0  ;;  %vm537_vm14 = vcmp.ge.s32.totalorder %v472_v59, 0  ;;  %v474_v19 = vld [vmem:[%s2042_s13] sm:$0xff]  ;;  %v481_v36 = vld [vmem:[%s2042_s13 + $0x38] sm:$0xff] }
  0x2e   : > { %v567_v61 = vsel %vm535_vm12, 1, %v1823_v0  ;;  %v566_v62 = vsel %vm534_vm13, 1, %v1823_v0  ;;  %vm536_vm15 = vcmp.ge.s32.totalorder %v471_v60, 0  ;;  %v569_v63 = vsel %vm537_vm14, 1, %v1823_v0  ;;  %v473_v27 = vld [vmem:[%s404_s18] sm:$0x3] }
  0x2f   : > { %v568_v1 = vsel %vm536_vm15, 1, %v1823_v0  ;;  %vm434_vm0 = vcmask 57344   ;;  %v1824_v2 = vmov -1e+30   ;;  %vm436_vm1 = vcmask 60416   ;;  %v478_v28 = vld [vmem:[%s2042_s13 + $0x20] sm:$0xff] }
  0x30   : > { %435 = vst.msk [vmem:[%s2006_s17] sm:$0x1] %vm434_vm0, %v1824_v2  ;;  %v2575_v0 = vmov 0.0   ;;  %v806_v15 = vlaneseq  ;;  %vm731_vm3 = vcmask 64512   ;;  %v2590_v39 = vmov 0  ;;  %s1405_s12 = sshll.u32 %s1813_s24, 4 }
  0x31   : > { %598 = vperm.xlu1 %1616, %v547_v21   ;;  %595 = vperm.xlu0 %1615, %v546_v22   ;;  %437 = vst.msk [vmem:[%s2011_s19] sm:$0xf] %vm436_vm1, %v2575_v0  ;;  %438 = vst.msk [vmem:[%s2020_s20] sm:$0xf] %vm436_vm1, %v2575_v0  ;;  %v476_v21 = vld [vmem:[%s2042_s13 + $0x10] sm:$0xff]  ;;  %vm1095_vm15 = vcmask 1043456   ;;  %s2437_s27 = scalar_lea.hbm %s2571_s3, %s1405_s12 }
  0x32   : > { %v807_v18 = vshrl.u32 %v806_v15, 7  ;;  %s1153_s15 = sshll.u32 %s2006_s17, 4  ;;  %s1123_s11 = scalar_lea.sflag [#allocation3], %s2003_s16  ;;  %s2439_s15 = int_to_ptr.vmem [resolvable:$true] %s1153_s15 }
  0x33   : > { %s1683_s30 = scalar_lea.vmem %s2439_s15, 16  ;;  %s1827_s8 = smov [#allocation2]  }
  0x34   : > { %v947_v20 = vsub.s32 1, %v807_v18  ;;  %p1684_p12 = scmp.ne.s32.totalorder %s2439_s15, %s1683_s30 }
  0x35   : > { %604 = vperm.xlu1 %1616, %v549_v25   ;;  %601 = vperm.xlu0 %1615, %v548_v26   ;;  %v2057_v25 = vsub.s32 0, %v807_v18  ;;  %v479_v26 = vld [vmem:[%s2042_s13 + $0x28] sm:$0xff] }
  0x36   : > { %p1685_p13 = pnand %p1684_p12, %p1907_p4 }
  0x37   : > { %2589 = vst [vmem:[#allocation9_spill] sm:$0xff] %v2057_v25 }
  0x38   : > { %p1686_p0 = pneg %p1685_p13 }
  0x39   : > { %610 = vperm.xlu1 %1616, %v551_v29   ;;  %607 = vperm.xlu0 %1615, %v550_v30   ;;  %v948_v29 = vrot.slane %v473_v27, %v947_v20  ;;  %v944_v30 = vrot.slane %v473_v27, %v2057_v25  ;;  %v491_v27 = vld [vmem:[%s2042_s13 + $0x88] sm:$0xff] }
  0x3b   : > { %vm950_vm9 = vcmp.eq.s32.totalorder %v807_v18, %v948_v29  ;;  %vm2082_vm10 = vcmp.eq.s32.totalorder %v807_v18, %v944_v30 }
  0x3c   : > { %v2591_v39 = vsel %vm2082_vm10, 4294967295, %v2590_v39  ;;  %v1397_v43 = vsel %vm2082_vm10, 1.0, %v2575_v0  ;;  %v1398_v44 = vsel %vm950_vm9, 1.0, %v2575_v0 }
  0x3d   : > { %616 = vperm.xlu1 %1616, %v553_v33   ;;  %613 = vperm.xlu0 %1615, %v552_v34   ;;  %v477_v33 = vld [vmem:[%s2042_s13 + $0x18] sm:$0xff]  ;;  %v475_v34 = vld [vmem:[%s2042_s13 + $0x8] sm:$0xff]  ;;  %2592 = vst [vmem:[#allocation10_spill] sm:$0xff] %v2591_v39 }
  0x41   : > { %622 = vperm.xlu1 %1616, %v555_v37   ;;  %619 = vperm.xlu0 %1615, %v554_v38  }
  0x45   : > { %628 = vperm.xlu1 %1616, %v557_v41   ;;  %625 = vperm.xlu0 %1615, %v556_v42   ;;  %v480_v41 = vld [vmem:[%s2042_s13 + $0x30] sm:$0xff]  ;;  %v2576_v42 = vmov 1.0  }
  0x46   : > { %1399 = vmatprep.mubr.msk.f32.mxu0 %vm950_vm9, %v2576_v42  ;;  %1401 = vmatprep.mubr.msk.f32.mxu1 %vm950_vm9, %v2576_v42 }
  0x49   : > { %634 = vperm.xlu1 %1616, %v559_v45   ;;  %631 = vperm.xlu0 %1615, %v558_v46   ;;  %v483_v45 = vld [vmem:[%s2042_s13 + $0x48] sm:$0xff]  ;;  %v482_v46 = vld [vmem:[%s2042_s13 + $0x40] sm:$0xff] }
  0x4d   : > { %640 = vperm.xlu1 %1616, %v561_v49   ;;  %637 = vperm.xlu0 %1615, %v560_v50   ;;  %v1096_v49 = vsel %vm1095_vm15, %v1397_v43, 0.0  ;;  %v1097_v50 = vsel %vm1095_vm15, %v1398_v44, 0.0  ;;  %v495_v43 = vld [vmem:[%s2042_s13 + $0xa8] sm:$0xff]  ;;  %v494_v44 = vld [vmem:[%s2042_s13 + $0xa0] sm:$0xff] }
  0x4e   : > { %v1098_v56 = vadd.f32 %v1097_v50, %v1096_v49 }
  0x51   : > { %646 = vperm.xlu1 %1616, %v563_v53   ;;  %643 = vperm.xlu0 %1615, %v562_v54  }
  0x55   : > { %652 = vperm.xlu1 %1616, %v565_v57   ;;  %649 = vperm.xlu0 %1615, %v564_v58  }
  0x59   : > { %658 = vperm.xlu1 %1616, %v567_v61   ;;  %655 = vperm.xlu0 %1615, %v566_v62   ;;  %v485_v62 = vld [vmem:[%s2042_s13 + $0x58] sm:$0xff] }
  0x5d   : > { %664 = vperm.xlu1 %1616, %v569_v63   ;;  %661 = vperm.xlu0 %1615, %v568_v1   ;;  %v484_v63 = vld [vmem:[%s2042_s13 + $0x50] sm:$0xff] }
  0x7c   : > { %1099 = vadd.xlane.f32.xlu0 %v1098_v56 }
  0xa0   : > { %v578_v3 = vpop.permute.xlu1 %577  ;;  %v572_v4 = vpop.permute.xlu0 %571 }
  0xa1   : > { %vm666_vm2 = vcmp.eq.s32.totalorder %v572_v4, 1  ;;  %vm668_vm4 = vcmp.eq.s32.totalorder %v578_v3, 1  ;;  %v487_v4 = vld [vmem:[%s2042_s13 + $0x68] sm:$0xff] }
  0xa2   : > { %v2051_v22 = vsel %vm666_vm2, %v474_v19, -1e+30  ;;  %v2065_v31 = vsel %vm668_vm4, %v476_v21, -1e+30 }
  0xa3   : > { %v2069_v32 = vsel %vm731_vm3, %v2051_v22, -inf }
  0xa4   : > { %v2016_v5 = vpop.permute.xlu1 %580  ;;  %v2018_v6 = vpop.permute.xlu0 %574 }
  0xa5   : > { %vm669_vm7 = vcmp.eq.s32.totalorder %v2016_v5, 1  ;;  %vm667_vm8 = vcmp.eq.s32.totalorder %v2018_v6, 1  ;;  %v486_v5 = vld [vmem:[%s2042_s13 + $0x60] sm:$0xff] }
  0xa6   : > { %v2103_v47 = vsel %vm669_vm7, %v477_v33, -1e+30  ;;  %v2107_v48 = vsel %vm667_vm8, %v475_v34, -1e+30  ;;  %v493_v34 = vld [vmem:[%s2042_s13 + $0x98] sm:$0xff] }
  0xa7   : > { %v735_v60 = vsel %vm731_vm3, %v2103_v47, -inf  ;;  %v733_v61 = vsel %vm731_vm3, %v2107_v48, -inf }
  0xa8   : > { %v587_v7 = vpop.permute.xlu1 %586  ;;  %v584_v8 = vpop.permute.xlu0 %583 }
  0xa9   : > { %vm671_vm5 = vcmp.eq.s32.totalorder %v587_v7, 1  ;;  %vm670_vm6 = vcmp.eq.s32.totalorder %v584_v8, 1 }
  0xaa   : > { %v2075_v35 = vsel %vm671_vm5, %v479_v26, -1e+30  ;;  %v2086_v40 = vsel %vm670_vm6, %v478_v28, -1e+30 }
  0xab   : > { %v738_v51 = vsel %vm731_vm3, %v2075_v35, -inf  ;;  %v736_v52 = vsel %vm731_vm3, %v2086_v40, -inf }
  0xac   : > { %v2025_v9 = vpop.permute.xlu1 %592  ;;  %v2027_v10 = vpop.permute.xlu0 %589  ;;  %v739_v1 = vmax.f32 %v733_v61, %v738_v51  ;;  %v737_v2 = vmax.f32 %v2069_v32, %v736_v52 }
  0xad   : > { %vm673_vm11 = vcmp.eq.s32.totalorder %v2025_v9, 1  ;;  %vm672_vm12 = vcmp.eq.s32.totalorder %v2027_v10, 1  ;;  %v489_v9 = vld [vmem:[%s2042_s13 + $0x78] sm:$0xff]  ;;  %v488_v10 = vld [vmem:[%s2042_s13 + $0x70] sm:$0xff] }
  0xae   : > { %v2115_v53 = vsel %vm673_vm11, %v481_v36, -1e+30  ;;  %v2123_v57 = vsel %vm672_vm12, %v480_v41, -1e+30  ;;  %v492_v36 = vld [vmem:[%s2042_s13 + $0x90] sm:$0xff] }
  0xaf   : > { %v742_v3 = vsel %vm731_vm3, %v2115_v53, -inf  ;;  %v740_v6 = vsel %vm731_vm3, %v2123_v57, -inf }
  0xb0   : > { %v2029_v11 = vpop.permute.xlu1 %598  ;;  %v2031_v12 = vpop.permute.xlu0 %595  ;;  %v743_v19 = vmax.f32 %v735_v60, %v742_v3  ;;  %v497_v3 = vld [vmem:[%s2042_s13 + $0xb8] sm:$0xff] }
  0xb1   : > { %vm675_vm13 = vcmp.eq.s32.totalorder %v2029_v11, 1  ;;  %vm674_vm14 = vcmp.eq.s32.totalorder %v2031_v12, 1 }
  0xb2   : > { %v2125_v58 = vsel %vm675_vm13, %v483_v45, -1e+30  ;;  %v2127_v59 = vsel %vm674_vm14, %v482_v46, -1e+30 }
  0xb3   : > { %v746_v7 = vsel %vm731_vm3, %v2125_v58, -inf  ;;  %v744_v8 = vsel %vm731_vm3, %v2127_v59, -inf }
  0xb4   : > { %v2033_v13 = vpop.permute.xlu1 %604  ;;  %v2035_v14 = vpop.permute.xlu0 %601  ;;  %v747_v21 = vmax.f32 %v739_v1, %v746_v7  ;;  %v745_v26 = vmax.f32 %v737_v2, %v744_v8  ;;  %v498_v7 = vld [vmem:[%s2042_s13 + $0xc0] sm:$0xff] }
  0xb5   : > { %vm677_vm2 = vcmp.eq.s32.totalorder %v2033_v13, 1  ;;  %vm676_vm4 = vcmp.eq.s32.totalorder %v2035_v14, 1 }
  0xb6   : > { %v2154_v15 = vsel %vm677_vm2, %v485_v62, -1e+30  ;;  %v2158_v18 = vsel %vm676_vm4, %v484_v63, -1e+30 }
  0xb7   : > { %v748_v28 = vsel %vm731_vm3, %v2158_v18, -inf }
  0xb8   : > { %v2044_v16 = vpop.permute.xlu1 %610  ;;  %v2046_v17 = vpop.permute.xlu0 %607 }
  0xb9   : > { %vm679_vm5 = vcmp.eq.s32.totalorder %v2044_v16, 1  ;;  %vm678_vm6 = vcmp.eq.s32.totalorder %v2046_v17, 1  ;;  %v734_v17 = vsel %vm731_vm3, %v2065_v31, -inf }
  0xba   : > { %v2166_v20 = vsel %vm679_vm5, %v487_v4, -1e+30  ;;  %v741_v13 = vmax.f32 %v734_v17, %v740_v6  ;;  %v2168_v14 = vsel %vm678_vm6, %v486_v5, -1e+30  ;;  %v496_v4 = vld [vmem:[%s2042_s13 + $0xb0] sm:$0xff]  ;;  %v499_v6 = vld [vmem:[%s2042_s13 + $0xc8] sm:$0xff] }
  0xbb   : > { %2593 = vst [vmem:[#allocation11_spill] sm:$0xff] %v2166_v20  ;;  %2594 = vst [vmem:[#allocation12_spill] sm:$0xff] %v2168_v14  ;;  %v754_v33 = vsel %vm731_vm3, %v2166_v20, -inf  ;;  %v752_v41 = vsel %vm731_vm3, %v2168_v14, -inf }
  0xbc   : > { %v2053_v23 = vpop.permute.xlu1 %616  ;;  %v2055_v24 = vpop.permute.xlu0 %613  ;;  %v749_v46 = vmax.f32 %v741_v13, %v748_v28  ;;  %v755_v51 = vmax.f32 %v747_v21, %v754_v33  ;;  %v753_v62 = vmax.f32 %v745_v26, %v752_v41  ;;  %v503_v41 = vld [vmem:[%s2042_s13 + $0xe8] sm:$0xff] }
  0xbd   : > { %vm681_vm7 = vcmp.eq.s32.totalorder %v2053_v23, 1  ;;  %vm680_vm8 = vcmp.eq.s32.totalorder %v2055_v24, 1  ;;  %v490_v23 = vld [vmem:[%s2042_s13 + $0x80] sm:$0xff]  ;;  %v750_v24 = vsel %vm731_vm3, %v2154_v15, -inf }
  0xbe   : > { %v2176_v16 = vsel %vm681_vm7, %v489_v9, -1e+30  ;;  %v2178_v29 = vsel %vm680_vm8, %v488_v10, -1e+30  ;;  %v751_v45 = vmax.f32 %v743_v19, %v750_v24  ;;  %v500_v19 = vld [vmem:[%s2042_s13 + $0xd0] sm:$0xff] }
  0xbf   : > { %v758_v49 = vsel %vm731_vm3, %v2176_v16, -inf  ;;  %v756_v50 = vsel %vm731_vm3, %v2178_v29, -inf }
  0xc0   : > { %v2078_v37 = vpop.permute.xlu1 %622  ;;  %v2080_v38 = vpop.permute.xlu0 %619  ;;  %v759_v2 = vmax.f32 %v751_v45, %v758_v49 }
  0xc1   : > { %vm683_vm9 = vcmp.eq.s32.totalorder %v2078_v37, 1  ;;  %vm682_vm11 = vcmp.eq.s32.totalorder %v2080_v38, 1  ;;  %v757_v38 = vmax.f32 %v749_v46, %v756_v50 }
  0xc2   : > { %v2198_v52 = vsel %vm683_vm9, %v491_v27, -1e+30 }
  0xc3   : > { %v762_v5 = vsel %vm731_vm3, %v2198_v52, -inf }
  0xc4   : > { %v2117_v54 = vpop.permute.xlu1 %628  ;;  %v2119_v55 = vpop.permute.xlu0 %625  ;;  %v763_v27 = vmax.f32 %v755_v51, %v762_v5 }
  0xc5   : > { %vm685_vm12 = vcmp.eq.s32.totalorder %v2117_v54, 1  ;;  %vm684_vm13 = vcmp.eq.s32.totalorder %v2119_v55, 1  ;;  %v2202_v54 = vsel %vm682_vm11, %v490_v23, -1e+30 }
  0xc6   : > { %v2204_v56 = vsel %vm685_vm12, %v493_v34, -1e+30  ;;  %v2208_v63 = vsel %vm684_vm13, %v492_v36, -1e+30  ;;  %v760_v55 = vsel %vm731_vm3, %v2202_v54, -inf }
  0xc7   : > { %v766_v8 = vsel %vm731_vm3, %v2204_v56, -inf  ;;  %v764_v9 = vsel %vm731_vm3, %v2208_v63, -inf  ;;  %v761_v23 = vmax.f32 %v753_v62, %v760_v55 }
  0xc8   : > { %v635_v11 = vpop.permute.xlu1 %634  ;;  %v632_v12 = vpop.permute.xlu0 %631  ;;  %v767_v33 = vmax.f32 %v759_v2, %v766_v8  ;;  %v765_v34 = vmax.f32 %v757_v38, %v764_v9 }
  0xc9   : > { %vm687_vm14 = vcmp.eq.s32.totalorder %v635_v11, 1  ;;  %vm686_vm15 = vcmp.eq.s32.totalorder %v632_v12, 1  ;;  %v501_v12 = vld [vmem:[%s2042_s13 + $0xd8] sm:$0xff] }
  0xca   : > { %v2210_v1 = vsel %vm687_vm14, %v495_v43, -1e+30  ;;  %v2212_v37 = vsel %vm686_vm15, %v494_v44, -1e+30 }
  0xcb   : > { %v770_v10 = vsel %vm731_vm3, %v2210_v1, -inf  ;;  %v768_v11 = vsel %vm731_vm3, %v2212_v37, -inf }
  0xcc   : > { %v641_v30 = vpop.permute.xlu1 %640  ;;  %v638_v32 = vpop.permute.xlu0 %637  ;;  %v771_v43 = vmax.f32 %v763_v27, %v770_v10  ;;  %v769_v44 = vmax.f32 %v761_v23, %v768_v11 }
  0xcd   : > { %vm689_vm2 = vcmp.eq.s32.totalorder %v641_v30, 1  ;;  %vm688_vm4 = vcmp.eq.s32.totalorder %v638_v32, 1  ;;  %v502_v32 = vld [vmem:[%s2042_s13 + $0xe0] sm:$0xff] }
  0xce   : > { %v2233_v21 = vsel %vm689_vm2, %v497_v3, -1e+30  ;;  %v2236_v26 = vsel %vm688_vm4, %v496_v4, -1e+30 }
  0xcf   : > { %v774_v45 = vsel %vm731_vm3, %v2233_v21, -inf  ;;  %v772_v46 = vsel %vm731_vm3, %v2236_v26, -inf }
  0xd0   : > { %v647_v60 = vpop.permute.xlu1 %646  ;;  %v644_v61 = vpop.permute.xlu0 %643  ;;  %v775_v3 = vmax.f32 %v767_v33, %v774_v45  ;;  %v773_v4 = vmax.f32 %v765_v34, %v772_v46 }
  0xd1   : > { %vm691_vm5 = vcmp.eq.s32.totalorder %v647_v60, 1  ;;  %vm690_vm6 = vcmp.eq.s32.totalorder %v644_v61, 1 }
  0xd2   : > { %v2239_v24 = vsel %vm691_vm5, %v499_v6, -1e+30  ;;  %v2242_v28 = vsel %vm690_vm6, %v498_v7, -1e+30  ;;  %v505_v6 = vld [vmem:[%s2042_s13 + $0xf8] sm:$0xff]  ;;  %v504_v7 = vld [vmem:[%s2042_s13 + $0xf0] sm:$0xff] }
  0xd3   : > { %v778_v51 = vsel %vm731_vm3, %v2239_v24, -inf  ;;  %v776_v60 = vsel %vm731_vm3, %v2242_v28, -inf  ;;  %s1687_s13 = sshll.u32 %s1827_s8, 4  ;;  %s1688_s13 = int_to_ptr.vmem [resolvable:$false] %s1687_s13 }
  0xd4   : > { %v653_v17 = vpop.permute.xlu1 %652  ;;  %v650_v13 = vpop.permute.xlu0 %649  ;;  %v779_v8 = vmax.f32 %v771_v43, %v778_v51  ;;  %v777_v9 = vmax.f32 %v769_v44, %v776_v60  ;;  %p1690_p1 = scmp.lt.s32.totalorder %s2439_s15, %s1688_s13 }
  0xd5   : > { %vm693_vm7 = vcmp.eq.s32.totalorder %v653_v17, 1  ;;  %vm692_vm8 = vcmp.eq.s32.totalorder %v650_v13, 1 }
  0xd6   : > { %v2244_v36 = vsel %vm693_vm7, %v501_v12, -1e+30  ;;  %v2246_v30 = vsel %vm692_vm8, %v500_v19, -1e+30 }
  0xd7   : > { %v782_v61 = vsel %vm731_vm3, %v2244_v36, -inf  ;;  %v780_v62 = vsel %vm731_vm3, %v2246_v30, -inf }
  0xd8   : > { %v659_v49 = vpop.permute.xlu1 %658  ;;  %v656_v50 = vpop.permute.xlu0 %655  ;;  %v783_v12 = vmax.f32 %v775_v3, %v782_v61  ;;  %v781_v17 = vmax.f32 %v773_v4, %v780_v62  ;;  %v2278_v61 = vld [vmem:[%s2006_s17] sm:$0x1] }
  0xd9   : > { %vm695_vm9 = vcmp.eq.s32.totalorder %v659_v49, 1  ;;  %vm694_vm11 = vcmp.eq.s32.totalorder %v656_v50, 1  ;;  %2595 = vst [vmem:[#allocation13_spill] sm:$0xff] %v2278_v61 }
  0xda   : > { %v2262_v2 = vsel %vm695_vm9, %v503_v41, -1e+30  ;;  %v2264_v38 = vsel %vm694_vm11, %v502_v32, -1e+30 }
  0xdb   : > { %v786_v5 = vsel %vm731_vm3, %v2262_v2, -inf  ;;  %v784_v55 = vsel %vm731_vm3, %v2264_v38, -inf }
  0xdc   : > { %v665_v10 = vpop.permute.xlu1 %664  ;;  %v662_v11 = vpop.permute.xlu0 %661  ;;  %v787_v19 = vmax.f32 %v779_v8, %v786_v5  ;;  %v785_v13 = vmax.f32 %v777_v9, %v784_v55 }
  0xdd   : > { %vm697_vm12 = vcmp.eq.s32.totalorder %v665_v10, 1  ;;  %vm696_vm13 = vcmp.eq.s32.totalorder %v662_v11, 1 }
  0xde   : > { %v2272_v27 = vsel %vm697_vm12, %v505_v6, -1e+30  ;;  %v728_v23 = vsel %vm696_vm13, %v504_v7, -1e+30  ;;  %v792_v43 = vmax.f32 %v785_v13, %v787_v19 }
  0xdf   : > { %v790_v33 = vsel %vm731_vm3, %v2272_v27, -inf  ;;  %v788_v34 = vsel %vm731_vm3, %v728_v23, -inf }
  0xe0   : > { %v791_v41 = vmax.f32 %v783_v12, %v790_v33  ;;  %v789_v32 = vmax.f32 %v781_v17, %v788_v34 }
  0xe2   : > { %v793_v44 = vmax.f32 %v789_v32, %v791_v41 }
  0xe4   : > { %v794_v45 = vmax.f32 %v792_v43, %v793_v44 }
  0xe6   : > { %v795_v46 = vrot.slane %v794_v45, 4 }
  0xe8   : > { %v796_v49 = vmax.f32 %v794_v45, %v795_v46 }
  0xea   : > { %v797_v50 = vrot.slane %v796_v49, 2 }
  0xec   : > { %v798_v51 = vmax.f32 %v796_v49, %v797_v50 }
  0xee   : > { %v799_v60 = vrot.slane %v798_v51, 1 }
  0xf0   : > { %v800_v62 = vmax.f32 %v798_v51, %v799_v60 }
  0xf2   : > { %v2281_v3 = vmax.f32 %v2278_v61, %v800_v62 }
  0xf4   : > { %2596 = vst [vmem:[#allocation14_spill] sm:$0xff] %v2281_v3  ;;  %v2285_v4 = vrot.slane %v2281_v3, %v2057_v25  ;;  %1102 = vst.msk [vmem:[%s2006_s17] sm:$0x1] %vm434_vm0, %v2281_v3  ;;  %vm439_vm0 = vcmask 3072   ;;  %s1689_s17 = scalar_lea.vmem %s1688_s13, 32 }
  0xf5   : > { %p1691_p2 = scmp.lt.s32.totalorder %s1689_s17, %s1683_s30 }
  0xf6   : > { %v841_v55 = vsub.f32 %v728_v23, %v2285_v4  ;;  %v811_v7 = vsub.f32 %v2051_v22, %v2285_v4  ;;  %v812_v8 = vsub.f32 %v2107_v48, %v2285_v4  ;;  %v813_v9 = vsub.f32 %v2065_v31, %v2285_v4 }
  0xf7   : > { %v814_v11 = vsub.f32 %v2103_v47, %v2285_v4  ;;  %v815_v17 = vsub.f32 %v2086_v40, %v2285_v4  ;;  %v816_v13 = vsub.f32 %v2075_v35, %v2285_v4  ;;  %v817_v34 = vsub.f32 %v2123_v57, %v2285_v4  ;;  %p1692_p3 = por %p1691_p2, %p1690_p1 }
  0xf8   : > { %v903_v6 = vmul.f32 1.442695, %v841_v55  ;;  %v843_v19 = vmul.f32 1.442695, %v811_v7  ;;  %v845_v33 = vmul.f32 1.442695, %v812_v8  ;;  %v827_v32 = vsub.f32 %v2202_v54, %v2285_v4 }
  0xf9   : > { %v847_v41 = vmul.f32 1.442695, %v813_v9  ;;  %v849_v43 = vmul.f32 1.442695, %v814_v11  ;;  %v851_v44 = vmul.f32 1.442695, %v815_v17  ;;  %v829_v45 = vsub.f32 %v2208_v63, %v2285_v4  ;;  %p1693_p5 = pnand %p1692_p3, %p1686_p0 }
  0xfa   : > { %1617 = vpow2.f32 %v903_v6  ;;  %v853_v46 = vmul.f32 1.442695, %v816_v13  ;;  %v830_v49 = vsub.f32 %v2204_v56, %v2285_v4  ;;  %v855_v50 = vmul.f32 1.442695, %v817_v34 }
  0xfb   : > { %1619 = vpow2.f32 %v843_v19  ;;  %v831_v51 = vsub.f32 %v2212_v37, %v2285_v4  ;;  %v875_v60 = vmul.f32 1.442695, %v827_v32  ;;  %v832_v62 = vsub.f32 %v2210_v1, %v2285_v4 }
  0xfc   : > { %1621 = vpow2.f32 %v845_v33  ;;  %v833_v6 = vsub.f32 %v2236_v26, %v2285_v4  ;;  %v879_v7 = vmul.f32 1.442695, %v829_v45  ;;  %v834_v8 = vsub.f32 %v2233_v21, %v2285_v4 }
  0xfd   : > { %1623 = vpow2.f32 %v847_v41  ;;  %v881_v9 = vmul.f32 1.442695, %v830_v49  ;;  %v818_v11 = vsub.f32 %v2115_v53, %v2285_v4  ;;  %v883_v17 = vmul.f32 1.442695, %v831_v51 }
  0xfe   : > { %1625 = vpow2.f32 %v849_v43  ;;  %v819_v19 = vsub.f32 %v2127_v59, %v2285_v4  ;;  %v885_v13 = vmul.f32 1.442695, %v832_v62  ;;  %v835_v33 = vsub.f32 %v2242_v28, %v2285_v4 }
  0xff   : > { %1627 = vpow2.f32 %v851_v44  ;;  %v887_v34 = vmul.f32 1.442695, %v833_v6  ;;  %v836_v32 = vsub.f32 %v2239_v24, %v2285_v4  ;;  %v889_v43 = vmul.f32 1.442695, %v834_v8 }
 0x100   : > { %1629 = vpow2.f32 %v853_v46  ;;  %v820_v44 = vsub.f32 %v2125_v58, %v2285_v4  ;;  %v857_v45 = vmul.f32 1.442695, %v818_v11  ;;  %v821_v49 = vsub.f32 %v2158_v18, %v2285_v4 }
 0x101   : > { %1631 = vpow2.f32 %v855_v50  ;;  %v837_v50 = vsub.f32 %v2246_v30, %v2285_v4  ;;  %v859_v51 = vmul.f32 1.442695, %v819_v19  ;;  %v822_v62 = vsub.f32 %v2154_v15, %v2285_v4 }
 0x102   : > { %1633 = vpow2.f32 %v875_v60  ;;  %v891_v6 = vmul.f32 1.442695, %v835_v33  ;;  %v823_v8 = vsub.f32 %v2168_v14, %v2285_v4  ;;  %v893_v11 = vmul.f32 1.442695, %v836_v32 }
 0x103   : > { %v824_v19 = vsub.f32 %v2166_v20, %v2285_v4  ;;  %v861_v33 = vmul.f32 1.442695, %v820_v44  ;;  %v895_v5 = vmul.f32 1.442695, %v837_v50  ;;  %v840_v42 = vsub.f32 %v2262_v2, %v2285_v4 }
 0x104   : > { %v2299_v10 = vpop.eup %1617  ;;  %v863_v25 = vmul.f32 1.442695, %v821_v49  ;;  %v865_v39 = vmul.f32 1.442695, %v822_v62 }
 0x105   : > { %v2304_v12 = vmul.f32 %v2299_v10, %v728_v23  ;;  %v828_v23 = vsub.f32 %v2198_v52, %v2285_v4  ;;  %v2334_v41 = vpop.eup %1619 }
 0x106   : > { %v907_v0 = vmul.f32 %v2334_v41, %v2051_v22 }
 0x107   : > { %v877_v55 = vmul.f32 1.442695, %v828_v23  ;;  %v1622_v23 = vpop.eup %1621 }
 0x108   : > { %v2340_v46 = vpop.eup %1623  ;;  %v1484_v44 = vpack.c.bf16 %v1622_v23, %v2334_v41 }
 0x109   : > { %1635 = vpow2.f32 %v877_v55  ;;  %v2346_v60 = vpop.eup %1625  ;;  %v842_v55 = vsub.f32 %v2272_v27, %v2285_v4  ;;  %v909_v62 = vmul.f32 %v2340_v46, %v2065_v31 }
 0x10a   : > { %1637 = vpow2.f32 %v879_v7  ;;  %v2352_v7 = vpop.eup %1627  ;;  %v1488_v31 = vpack.c.bf16 %v2346_v60, %v2340_v46 }
 0x10b   : > { %1639 = vpow2.f32 %v881_v9  ;;  %v838_v9 = vsub.f32 %v2244_v36, %v2285_v4  ;;  %v905_v3 = vmul.f32 1.442695, %v842_v55 }
 0x10c   : > { %1641 = vpow2.f32 %v883_v17  ;;  %v2358_v17 = vpop.eup %1629 }
 0x10d   : > { %1643 = vpow2.f32 %v885_v13  ;;  %v839_v13 = vsub.f32 %v2264_v38, %v2285_v4 }
 0x10e   : > { %1645 = vpow2.f32 %v887_v34  ;;  %v2364_v34 = vpop.eup %1631 }
 0x10f   : > { %1647 = vpow2.f32 %v889_v43  ;;  %v908_v43 = vmul.f32 %v1622_v23, %v2107_v48  ;;  %v1634_v32 = vpop.eup %1633  ;;  %v899_v14 = vmul.f32 1.442695, %v839_v13  ;;  %v911_v13 = vmul.f32 %v2352_v7, %v2086_v40 }
 0x110   : > { %1649 = vpow2.f32 %v857_v45  ;;  %v897_v45 = vmul.f32 1.442695, %v838_v9 }
 0x111   : > { %1651 = vpow2.f32 %v859_v51  ;;  %v923_v51 = vmul.f32 %v1634_v32, %v2202_v54 }
 0x112   : > { %1653 = vpow2.f32 %v891_v6  ;;  %v1516_v6 = vpack.c.bf16 %v908_v43, %v907_v0  ;;  %v1492_v43 = vpack.c.bf16 %v2358_v17, %v2352_v7 }
 0x113   : > { %v1636_v61 = vpop.eup %1635  ;;  %1655 = vpow2.f32 %v893_v11  ;;  %v901_v11 = vmul.f32 1.442695, %v840_v42  ;;  %v825_v42 = vsub.f32 %v2178_v29, %v2285_v4 }
 0x114   : > { %v1638_v50 = vpop.eup %1637  ;;  %1657 = vpow2.f32 %v861_v33  ;;  %v1482_v22 = vpack.c.bf16 %v1636_v61, %v1634_v32  ;;  %v924_v48 = vmul.f32 %v1636_v61, %v2198_v52  ;;  %v910_v52 = vmul.f32 %v2346_v60, %v2103_v47 }
 0x115   : > { %v1640_v20 = vpop.eup %1639  ;;  %1659 = vpow2.f32 %v895_v5  ;;  %v925_v49 = vmul.f32 %v1638_v50, %v2208_v63 }
 0x116   : > { %v1642_v55 = vpop.eup %1641  ;;  %1661 = vpow2.f32 %v905_v3  ;;  %v926_v9 = vmul.f32 %v1640_v20, %v2204_v56  ;;  %1483 = vmatprep.subr.bf16.mxu0 %v1482_v22  ;;  %v1486_v41 = vpack.c.bf16 %v1640_v20, %v1638_v50  ;;  %v1514_v23 = vpack.c.bf16 %v924_v48, %v923_v51 }
 0x117   : > { %v1644_v54 = vpop.eup %1643  ;;  %1663 = vpow2.f32 %v897_v45  ;;  %1485 = vmatpush3.bf16.msra.mxu0 %v1484_v44  ;;  %v927_v0 = vmul.f32 %v1642_v55, %v2212_v37  ;;  %v867_v3 = vmul.f32 1.442695, %v823_v8  ;;  %v869_v37 = vmul.f32 1.442695, %v824_v19 }
 0x118   : > { %v1646_v61 = vpop.eup %1645  ;;  %1665 = vpow2.f32 %v863_v25  ;;  %v928_v63 = vmul.f32 %v1644_v54, %v2210_v1  ;;  %1487 = vmatprep.subr.bf16.mxu0 %v1486_v41  ;;  %1515 = vmatprep.subr.bf16.mxu1 %v1514_v23  ;;  %v1518_v20 = vpack.c.bf16 %v926_v9, %v925_v49  ;;  %v826_v25 = vsub.f32 %v2176_v16, %v2285_v4 }
 0x119   : > { %v1648_v56 = vpop.eup %1647  ;;  %1667 = vpow2.f32 %v865_v39  ;;  %1517 = vmatpush3.bf16.msra.mxu1 %v1516_v6  ;;  %v1490_v1 = vpack.c.bf16 %v1644_v54, %v1642_v55  ;;  %v912_v39 = vmul.f32 %v2358_v17, %v2075_v35  ;;  %v1520_v8 = vpack.c.bf16 %v910_v52, %v909_v62 }
 0x11a   : > { %v1650_v47 = vpop.eup %1649  ;;  %1669 = vpow2.f32 %v899_v14  ;;  %1519 = vmatprep.subr.bf16.mxu1 %v1518_v20  ;;  %v929_v46 = vmul.f32 %v1646_v61, %v2236_v26  ;;  %v930_v60 = vmul.f32 %v1648_v56, %v2233_v21  ;;  %v1522_v4 = vpack.c.bf16 %v928_v63, %v927_v0 }
 0x11b   : > { %v1652_v5 = vpop.eup %1651  ;;  %1671 = vpow2.f32 %v901_v11  ;;  %1489 = vmatpush3.bf16.msra.mxu0 %v1488_v31  ;;  %v871_v19 = vmul.f32 1.442695, %v825_v42  ;;  %v873_v32 = vmul.f32 1.442695, %v826_v25  ;;  %v1494_v35 = vpack.c.bf16 %v1648_v56, %v1646_v61  ;;  %v2597_v42 = vld [vmem:[#allocation12_spill] sm:$0xff]  ;;  %v2598_v31 = vld [vmem:[#allocation11_spill] sm:$0xff] }
 0x11c   : > { %v1654_v33 = vpop.eup %1653  ;;  %1491 = vmatprep.subr.bf16.mxu0 %v1490_v1  ;;  %1673 = vpow2.f32 %v867_v3  ;;  %v913_v26 = vmul.f32 %v2364_v34, %v2123_v57  ;;  %v914_v21 = vmul.f32 %v1650_v47, %v2115_v53  ;;  %v1524_v44 = vpack.c.bf16 %v912_v39, %v911_v13 }
 0x11d   : > { %v1656_v14 = vpop.eup %1655  ;;  %1521 = vmatpush3.bf16.msra.mxu1 %v1520_v8  ;;  %1675 = vpow2.f32 %v869_v37  ;;  %v931_v50 = vmul.f32 %v1654_v33, %v2242_v28  ;;  %v1526_v7 = vpack.c.bf16 %v930_v60, %v929_v46  ;;  %v1496_v49 = vpack.c.bf16 %v1650_v47, %v2364_v34 }
 0x11e   : > { %v1658_v40 = vpop.eup %1657  ;;  %1523 = vmatprep.subr.bf16.mxu1 %v1522_v4  ;;  %v932_v22 = vmul.f32 %v1656_v14, %v2239_v24  ;;  %1677 = vpow2.f32 %v871_v19  ;;  %v1498_v53 = vpack.c.bf16 %v1656_v14, %v1654_v33  ;;  %v915_v28 = vmul.f32 %v1652_v5, %v2127_v59 }
 0x11f   : > { %v1660_v45 = vpop.eup %1659  ;;  %1493 = vmatpush3.bf16.msra.mxu0 %v1492_v43  ;;  %1679 = vpow2.f32 %v873_v32  ;;  %v916_v24 = vmul.f32 %v1658_v40, %v2125_v58  ;;  %v1528_v9 = vpack.c.bf16 %v914_v21, %v913_v26  ;;  %v1500_v11 = vpack.c.bf16 %v1658_v40, %v1652_v5 }
 0x120   : > { %v1662_v51 = vpop.eup %1661  ;;  %1495 = vmatprep.subr.bf16.mxu0 %v1494_v35  ;;  %v2599_v39 = vmov 1.0  }
 0x121   : > { %v1664_v17 = vpop.eup %1663  ;;  %v938_v48 = vmul.f32 %v1662_v51, %v2272_v27  ;;  %1525 = vmatpush3.bf16.msra.mxu1 %v1524_v44  ;;  %v1510_v57 = vpack.c.bf16 %v1662_v51, %v2299_v10  ;;  %v933_v27 = vmul.f32 %v1660_v45, %v2246_v30  ;;  %v1530_v10 = vpack.c.bf16 %v932_v22, %v931_v50 }
 0x122   : > { %v1666_v6 = vpop.eup %1665  ;;  %1527 = vmatprep.subr.bf16.mxu1 %v1526_v7  ;;  %v934_v34 = vmul.f32 %v1664_v17, %v2244_v36  ;;  %v1502_v62 = vpack.c.bf16 %v1664_v17, %v1660_v45  ;;  %v1532_v61 = vpack.c.bf16 %v916_v24, %v915_v28 }
 0x123   : > { %v1668_v55 = vpop.eup %1667  ;;  %1497 = vmatpush3.bf16.msra.mxu0 %v1496_v49  ;;  %v1542_v41 = vpack.c.bf16 %v938_v48, %v2304_v12  ;;  %v917_v59 = vmul.f32 %v1666_v6, %v2158_v18 }
 0x124   : > { %v1670_v23 = vpop.eup %1669  ;;  %1499 = vmatprep.subr.bf16.mxu0 %v1498_v53  ;;  %v918_v58 = vmul.f32 %v1668_v55, %v2154_v15  ;;  %v1534_v36 = vpack.c.bf16 %v934_v34, %v933_v27  ;;  %v1504_v63 = vpack.c.bf16 %v1668_v55, %v1666_v6 }
 0x125   : > { %v1672_v54 = vpop.eup %1671  ;;  %1529 = vmatpush3.bf16.msra.mxu1 %v1528_v9  ;;  %v935_v0 = vmul.f32 %v1670_v23, %v2264_v38 }
 0x126   : > { %1531 = vmatprep.subr.bf16.mxu1 %v1530_v10  ;;  %v1674_v52 = vpop.eup %1673  ;;  %v936_v30 = vmul.f32 %v1672_v54, %v2262_v2  ;;  %v1506_v20 = vpack.c.bf16 %v1672_v54, %v1670_v23  ;;  %v1536_v15 = vpack.c.bf16 %v918_v58, %v917_v59 }
 0x127   : > { %1501 = vmatpush3.bf16.msra.mxu0 %v1500_v11  ;;  %v1676_v12 = vpop.eup %1675  ;;  %v919_v3 = vmul.f32 %v1674_v52, %v2597_v42 }
 0x128   : > { %1503 = vmatprep.subr.bf16.mxu0 %v1502_v62  ;;  %v1678_v56 = vpop.eup %1677  ;;  %v920_v18 = vmul.f32 %v1676_v12, %v2598_v31  ;;  %v1538_v25 = vpack.c.bf16 %v936_v30, %v935_v0  ;;  %v1508_v38 = vpack.c.bf16 %v1676_v12, %v1674_v52 }
 0x129   : > { %1533 = vmatpush3.bf16.msra.mxu1 %v1532_v61  ;;  %v1680_v47 = vpop.eup %1679  ;;  %v921_v2 = vmul.f32 %v1678_v56, %v2178_v29  ;;  %v1100_v29 = vpop.xlane.xlu0 %1099 }
 0x12a   : > { %1535 = vmatprep.subr.bf16.mxu1 %v1534_v36  ;;  %v922_v37 = vmul.f32 %v1680_v47, %v2176_v16  ;;  %v1540_v1 = vpack.c.bf16 %v920_v18, %v919_v3  ;;  %v1512_v5 = vpack.c.bf16 %v1680_v47, %v1678_v56  ;;  %v2601_v16 = vmov 0.0  }
 0x12b   : > { %1505 = vmatpush3.bf16.msra.mxu0 %v1504_v63  ;;  %440 = vst.msk [vmem:[%s2427_s14] sm:$0xf] %vm439_vm0, %v2601_v16 }
 0x12c   : > { %1507 = vmatprep.subr.bf16.mxu0 %v1506_v20  ;;  %v1544_v13 = vpack.c.bf16 %v922_v37, %v921_v2 }
 0x12d   : > { %1537 = vmatpush3.bf16.msra.mxu1 %v1536_v15 }
 0x12e   : > { %1539 = vmatprep.subr.bf16.mxu1 %v1538_v25 }
 0x12f   : > { %1509 = vmatpush3.bf16.msra.mxu0 %v1508_v38 }
 0x130   : > { %1511 = vmatprep.subr.bf16.mxu0 %v1510_v57 }
 0x131   : > { %1541 = vmatpush3.bf16.msra.mxu1 %v1540_v1 }
 0x132   : > { %1543 = vmatprep.subr.bf16.mxu1 %v1542_v41 }
 0x133   : > { %1513 = vmatpush3.bf16.msra.mxu0 %v1512_v5 }
 0x135   : > { %1545 = vmatpush3.bf16.msra.mxu1 %v1544_v13 }
 0x136   : > { %1400 = vmatmul.mubr.msk.f32.vlgmr.msra.gmra.mrb[0].mxu0 %vm2082_vm10, %v2599_v39 }
 0x138   : > { %1402 = vmatmul.mubr.msk.f32.vlgmr.msra.gmra.mrb[0].mxu1 %vm2082_vm10, %v2599_v39 }
 0x139   : > { %1696 = shalt.err (!%p1693_p5)
}
 0x13a   : > { %s1697_s28 = scalar_lea.hbm %s2437_s27, 16  ;;  %s1701_s18 = scalar_lea.hbm %s2571_s3, 32 }
 0x13b   : > { %p1698_p6 = scmp.ne.s32.totalorder %s2437_s27, %s1697_s28  ;;  %p1702_p10 = scmp.lt.u32.totalorder %s2437_s27, %s2571_s3 }
 0x13c   : > { %p1703_p11 = scmp.lt.u32.totalorder %s1701_s18, %s1697_s28  ;;  %p1705_p13 = scmp.lt.u32.totalorder %s1697_s28, %s2437_s27 }
 0x13d   : > { %p1699_p7 = pnand %p1698_p6, %p1907_p4 }
 0x13e   : > { %p1704_p12 = por %p1703_p11, %p1702_p10 }
 0x13f   : > { %p1700_p9 = pneg %p1699_p7 }
 0x140   : > { %p1706_p0 = por %p1705_p13, %p1704_p12 }
 0x142   : > { %p1707_p1 = pnand %p1706_p0, %p1700_p9 }
 0x144   : > { %1710 = shalt.err (!%p1707_p1)
}
 0x145   : > { %1546 = dma.vmem_to_hbm [thread:$0]  (%p1907_p4), %s2439_s15, 16, %s2437_s27, %s1123_s11   ;;  %v1118_v33 = vld [vmem:[%s2427_s14] sm:$0xf]  ;;  %v2602_v60 = vld [vmem:[#allocation13_spill] sm:$0xff]  ;;  %v1114_v21 = vld [vmem:[%s2020_s20] sm:$0xf] }
 0x146   : > { %v1119_v46 = vadd.f32 %v1118_v33, %v1100_v29  ;;  %v2603_v4 = vld [vmem:[#allocation14_spill] sm:$0xff]  ;;  %v2605_v40 = vld [vmem:[#allocation9_spill] sm:$0xff]  ;;  %v1103_v35 = vld [vmem:[%s2011_s19] sm:$0xf]  ;;  %s2606_s30 = sadd.s32 4294967295, %s1821_s26   ;;  %s1406_s27 = sshll.u32 %s1813_s24, 6 }
 0x147   : > { %v2604_v14 = vsub.f32 %v2602_v60, %v2603_v4  ;;  %s2473_s17 = sand.u32 1, %s2606_s30   ;;  %s1181_s15 = sshll.u32 %s2020_s20, 4  ;;  %s2493_s15 = int_to_ptr.vmem [resolvable:$true] %s1181_s15 }
 0x148   : > { %1121 = vst.msk [vmem:[%s2427_s14] sm:$0xf] %vm439_vm0, %v1119_v46  ;;  %s1167_s14 = sshll.u32 %s2011_s19, 4  ;;  %s2482_s16 = scalar_lea.hbm %s2572_s4, %s1406_s27  ;;  %s2484_s14 = int_to_ptr.vmem [resolvable:$true] %s1167_s14 }
 0x149   : > { %v803_v19 = vmul.f32 1.442695, %v2604_v14  ;;  %s2491_s18 = scalar_lea.hbm %s2573_s5, %s1406_s27  ;;  %s1127_s8 = scalar_lea.sflag [#allocation5], %s2473_s17 }
 0x14a   : > { %s1711_s13 = scalar_lea.vmem %s2484_s14, 64  ;;  %s1828_s30 = smov [#allocation4]  }
 0x14b   : > { %1681 = vpow2.f32 %v803_v19  ;;  %p1712_p2 = scmp.ne.s32.totalorder %s2484_s14, %s1711_s13  ;;  %s1715_s11 = sshll.u32 %s1828_s30, 4  ;;  %s1716_s11 = int_to_ptr.vmem [resolvable:$false] %s1715_s11 }
 0x14c   : > { %s1717_s28 = scalar_lea.vmem %s1716_s11, 128  ;;  %p1718_p6 = scmp.lt.s32.totalorder %s2484_s14, %s1716_s11 }
 0x14d   : > { %p1713_p3 = pnand %p1712_p2, %p1907_p4  ;;  %p1719_p7 = scmp.lt.s32.totalorder %s1717_s28, %s1711_s13 }
 0x14f   : > { %p1714_p5 = pneg %p1713_p3  ;;  %p1720_p9 = por %p1719_p7, %p1718_p6 }
 0x151   : > { %p1721_p10 = pnand %p1720_p9, %p1714_p5 }
 0x155   : > { %v1682_v43 = vpop.eup %1681 }
 0x156   : > { %v1108_v32 = vrot.slane %v1682_v43, %v2605_v40 }
 0x158   : > { %v1110_v51 = vmul.f32 %v1108_v32, %v1103_v35  ;;  %v1115_v48 = vmul.f32 %v1114_v21, %v1108_v32 }
 0x209   : > { %v1444_v45 = vpop.f32.mrb[0].mxu0 }
 0x20a   : > { %v1445_v26 = vpop.f32.mrb[1].mxu0 }
 0x20b   : > { %v1446_v44 = vadd.f32 %v1445_v26, %v1444_v45  ;;  %v1479_v50 = vpop.f32.mrb[0].mxu1 }
 0x20c   : > { %v1480_v22 = vpop.f32.mrb[1].mxu1 }
 0x20d   : > { %v1111_v7 = vadd.f32 %v1446_v44, %v1110_v51  ;;  %v1481_v17 = vadd.f32 %v1480_v22, %v1479_v50 }
 0x20f   : > { %1113 = vst.msk [vmem:[%s2011_s19] sm:$0xf] %vm436_vm1, %v1111_v7  ;;  %v1116_v49 = vadd.f32 %v1481_v17, %v1115_v48 }
 0x210   : > { %1724 = shalt.err (!%p1721_p10)
}
 0x211   : > { %s1725_s19 = scalar_lea.hbm %s2482_s16, 64  ;;  %s1729_s12 = scalar_lea.hbm %s2572_s4, 128 }
 0x212   : > { %p1726_p11 = scmp.ne.s32.totalorder %s2482_s16, %s1725_s19  ;;  %p1730_p0 = scmp.lt.u32.totalorder %s2482_s16, %s2572_s4 }
 0x213   : > { %p1731_p1 = scmp.lt.u32.totalorder %s1729_s12, %s1725_s19  ;;  %p1733_p3 = scmp.lt.u32.totalorder %s1725_s19, %s2482_s16 }
 0x214   : > { %p1727_p12 = pnand %p1726_p11, %p1907_p4 }
 0x215   : > { %p1732_p2 = por %p1731_p1, %p1730_p0 }
 0x216   : > { %p1728_p13 = pneg %p1727_p12 }
 0x217   : > { %p1734_p5 = por %p1733_p3, %p1732_p2 }
 0x219   : > { %p1735_p6 = pnand %p1734_p5, %p1728_p13 }
 0x21b   : > { %1738 = shalt.err (!%p1735_p6)
}
 0x21c   : > { %1547 = dma.vmem_to_hbm [thread:$0]  (%p1907_p4), %s2484_s14, 64, %s2482_s16, %s1127_s8   ;;  %1117 = vst.msk [vmem:[%s2020_s20] sm:$0xf] %vm436_vm1, %v1116_v49 }
 0x21d   : > { %s1739_s13 = scalar_lea.vmem %s2493_s15, 64  ;;  %s1829_s28 = smov [#allocation6]  }
 0x21e   : > { %p1740_p7 = scmp.ne.s32.totalorder %s2493_s15, %s1739_s13  ;;  %s1743_s19 = sshll.u32 %s1829_s28, 4  ;;  %s1744_s19 = int_to_ptr.vmem [resolvable:$false] %s1743_s19 }
 0x21f   : > { %s1745_s27 = scalar_lea.vmem %s1744_s19, 128  ;;  %p1746_p11 = scmp.lt.s32.totalorder %s2493_s15, %s1744_s19 }
 0x220   : > { %p1741_p9 = pnand %p1740_p7, %p1907_p4  ;;  %p1747_p12 = scmp.lt.s32.totalorder %s1745_s27, %s1739_s13 }
 0x222   : > { %p1742_p10 = pneg %p1741_p9  ;;  %p1748_p13 = por %p1747_p12, %p1746_p11 }
 0x224   : > { %p1749_p0 = pnand %p1748_p13, %p1742_p10 }
 0x226   : > { %1752 = shalt.err (!%p1749_p0)
}
 0x227   : > { %s1753_s20 = scalar_lea.hbm %s2491_s18, 64  ;;  %s1757_s24 = scalar_lea.hbm %s2573_s5, 128 }
 0x228   : > { %p1754_p1 = scmp.ne.s32.totalorder %s2491_s18, %s1753_s20  ;;  %p1758_p5 = scmp.lt.u32.totalorder %s2491_s18, %s2573_s5 }
 0x229   : > { %p1759_p6 = scmp.lt.u32.totalorder %s1757_s24, %s1753_s20  ;;  %p1761_p9 = scmp.lt.u32.totalorder %s1753_s20, %s2491_s18 }
 0x22a   : > { %p1755_p2 = pnand %p1754_p1, %p1907_p4 }
 0x22b   : > { %p1760_p7 = por %p1759_p6, %p1758_p5 }
 0x22c   : > { %p1756_p3 = pneg %p1755_p2 }
 0x22d   : > { %p1762_p10 = por %p1761_p9, %p1760_p7 }
 0x22f   : > { %p1763_p11 = pnand %p1762_p10, %p1756_p3 }
 0x231   : > { %1766 = shalt.err (!%p1763_p11)
}
 0x232   : > { %1548 = dma.vmem_to_hbm [thread:$0]  (%p1907_p4), %s2493_s15, 64, %s2491_s18, %s1127_s8  }
 0x233 PF: > { %p1562_p12 = scmp.ge.s32.totalorder %s1821_s26, 2  ;;  %s1196_s11 = sand.u32 1, %s1801_s21  }
 0x234   : > { %s1197_s13 = scalar_lea.sflag [#allocation3], %s1196_s11 }
 0x235   : > { %p1553_p13 = pnand %p1562_p12, %p1916_p8 }
 0x237   : > { %1792 = dma.done.wait (!%p1553_p13), %s1197_s13, 16  }
 0x238   : > { %1794 = vsyncadd (!%p1553_p13), %s1197_s13, 4294967280  ;;  %s2607_s28 = sadd.s32 4294967294, %s1821_s26  }
 0x239   : > { %s1204_s19 = sand.u32 1, %s2607_s28  }
 0x23a   : > { %s1205_s7 = scalar_lea.sflag [#allocation5], %s1204_s19 }
 0x23b   : > { %1796 = dma.done.wait (!%p1553_p13), %s1205_s7, 128  }
 0x23c   : > { %1798 = vsyncadd (!%p1553_p13), %s1205_s7, 4294967168  ;;  %s23_s26 = sadd.s32 1, %s1821_s26   ;;  %s2608_s21 = smov %s1805_s22 }
 0x23d   : > { %p20_p4 = scmp.ge.s32.totalorder %s23_s26, 4   ;;  %s2609_s22 = smov %s1809_s23 }
 0x23e   : > { %s2610_s23 = smov %s1922_s10  ;;  %s2611_s24 = smov %s1817_s25 }
 0x23f   : > { %s2612_s25 = smov %s2614_s29  ;;  %22 = sbr.rel (!%p20_p4) target bundleno = 6 (0x6), region = 121 }
 0x246   :  { %1229 = vsyncpa [#allocation3], 1 }
 0x247   :  { %1231 = vsyncpa [#allocation3 + $0x1], 1 }
 0x248   :  { %1232 = vsyncpa [#allocation5], 1 }
 0x249   :  { %1234 = vsyncpa [#allocation5 + $0x1], 1 }

</bundles_post_ra>
